<compile_context>
chip_gen: v5e
topology: v5e:2x2
jax: 0.10.0
libtpu: 0.0.40
codegen_flags: <defaults>
</compile_context>

<pallas_src>
import functools

import jax
import jax.numpy as jnp
from jax.experimental import pallas as pl
from jax.experimental.pallas import tpu as pltpu

_LANE = 128


def _round_up(v: int, m: int) -> int:
    return -(-v // m) * m


def _vmem_capacity_bytes() -> int:
    try:
        return int(getattr(pltpu.get_tpu_info(), "vmem_capacity_bytes", 64 << 20))
    except Exception:
        return 64 << 20            # conservative default (v7x per-core VMEM)


def _choose_tile(BN: int, per_col_bytes: int, budget_bytes: int):
    """Lane-tile width: multiple of 128 (or the full column count)."""
    if BN < 2 * _LANE:
        return BN, BN                                   # single full tile (always legal)
    cap = max(_LANE, min(budget_bytes // max(per_col_bytes, 1), BN))
    cap = (cap // _LANE) * _LANE
    # keep >= 2 grid steps so v7x's two TensorCores both get work
    cap = max(_LANE, min(cap, ((BN // 2) // _LANE) * _LANE))
    # prefer a tile that divides B*N exactly (avoids padding the activations)
    tn = cap
    while tn >= _LANE and tn >= cap // 4:
        if BN % tn == 0:
            return tn, BN
        tn -= _LANE
    return cap, _round_up(BN, cap)                      # fall back to padding


def _unroll_weight(W, T: int, K: int, s: int, T_out: int):
    """(Cin, Cout, 1, K) ConvTranspose weight -> banded (Cout*T_out, T*Cin)."""
    Cin, Cout = W.shape[0], W.shape[1]
    Wk = jnp.transpose(W[:, :, 0, :].astype(jnp.float32), (1, 2, 0))   # (Cout, K, Cin)
    Wu = jnp.zeros((Cout, T_out, T, Cin), jnp.float32)
    for t in range(T):                                   # trace-time loop, T is small
        Wu = Wu.at[:, t * s:t * s + K, t, :].set(Wk)
    return Wu.reshape(Cout * T_out, T * Cin)


def _gated_deconv_kernel(x_ref, w_ref, b_ref, o_ref):
    """One grid step: all output time steps & channels for one tile of columns.

    x_ref: (T*Cin, tn)            lane-dense input columns
    w_ref: (3, Cout*T_out, T*Cin) unrolled transposed-conv weights (P, Q, R)
    b_ref: (3, Cout*T_out, 1)     per-row bias
    o_ref: (Cout*T_out, tn)       lane-dense output tile
    """
    x = x_ref[...]
    dot = functools.partial(jnp.dot, preferred_element_type=jnp.float32,
                            precision=jax.lax.Precision.HIGHEST)
    p = dot(w_ref[0], x) + b_ref[0]
    q = dot(w_ref[1], x) + b_ref[1]
    r = dot(w_ref[2], x) + b_ref[2]
    h = jnp.maximum(p * jax.nn.sigmoid(q) + r, 0.0)
    o_ref[...] = h.astype(o_ref.dtype)


@functools.partial(jax.jit, static_argnames=("kernel_size", "stride"))
def temporal_deconv2(X, params, kernel_size: int, stride: int):
    """X: (B, T, N, Cin) float32 -> (B, T_out, N, Cout) float32."""
    W1, b1, W2, b2, W3, b3 = params          # W: (Cin, Cout, 1, K), b: (Cout,)
    B, T, N, Cin = X.shape
    Cout = W1.shape[1]
    K, s = kernel_size, stride
    T_out = (T - 1) * s + K
    C = T * Cin                              # fused contraction dim
    M = Cout * T_out                         # fused output rows per gate
    BN = B * N

    # Fused weights / bias: all taps + all time steps + all gates in one (3,M,C).
    Wu = jnp.stack([_unroll_weight(W, T, K, s, T_out) for W in (W1, W2, W3)])
    bb = jnp.stack([jnp.repeat(b.astype(jnp.float32), T_out) for b in (b1, b2, b3)])
    bb = bb[:, :, None]                                              # (3, M, 1)

    # Lane-dense activations: (B, T, N, Cin) -> (T*Cin, B*N).
    Xt = jnp.transpose(X, (1, 3, 0, 2)).reshape(C, BN)

    # VMEM-budgeted lane tile (multiple of 128, or full column count).
    r8 = lambda v: _round_up(v, 8)
    vmem_limit = min(int(_vmem_capacity_bytes() * 3 // 4), 96 * 1024 * 1024)
    fixed_bytes = 4 * 3 * 2 * r8(M) * (_round_up(C, _LANE) + _LANE)  # weights + bias
    per_col_bytes = 4 * (2 * r8(C) + 8 * r8(M))                      # io blocks + temps
    budget = max(vmem_limit - fixed_bytes, 1 << 20)
    tn, BN_pad = _choose_tile(BN, per_col_bytes, budget)

    if BN_pad != BN:
        Xt = jnp.pad(Xt, ((0, 0), (0, BN_pad - BN)))

    out2d = pl.pallas_call(
        _gated_deconv_kernel,
        out_shape=jax.ShapeDtypeStruct((M, BN_pad), X.dtype),
        grid=(BN_pad // tn,),
        in_specs=[
            pl.BlockSpec((C, tn), lambda i: (0, i)),
            pl.BlockSpec((3, M, C), lambda i: (0, 0, 0)),
            pl.BlockSpec((3, M, 1), lambda i: (0, 0, 0)),
        ],
        out_specs=pl.BlockSpec((M, tn), lambda i: (0, i)),
        compiler_params=pltpu.CompilerParams(
            dimension_semantics=("parallel",),
            vmem_limit_bytes=vmem_limit),
    )(Xt, Wu, bb)

    if BN_pad != BN:
        out2d = out2d[:, :BN]
    # (Cout*T_out, B*N) -> (B, T_out, N, Cout)
    return out2d.reshape(Cout, T_out, B, N).transpose(2, 1, 3, 0)


def _ref_forward(X, params, K, s):
    """Pure-JAX reference (direct transposed-conv scatter) for validation."""
    W1, b1, W2, b2, W3, b3 = params
    B, T, N, Cin = X.shape
    Cout = W1.shape[1]
    T_out = (T - 1) * s + K
    Xc = jnp.transpose(X, (0, 3, 2, 1))           # (B, Cin, N, T)

    def convt(W, b):
        out = jnp.zeros((B, Cout, N, T_out), jnp.float32) + b[None, :, None, None]
        for k in range(K):
            contrib = jnp.einsum('bint,io->bont', Xc, W[:, :, 0, k])
            out = out.at[:, :, :, k:k + (T - 1) * s + 1:s].add(contrib)
        return out

    P = convt(W1, b1)
    Q = jax.nn.sigmoid(convt(W2, b2))
    R = convt(W3, b3)
    H = jnp.maximum(P * Q + R, 0.0)
    return jnp.transpose(H, (0, 3, 2, 1))         # (B, T_out, N, Cout)


def _make_params(key, Cin, Cout, K):
    ks = jax.random.split(key, 6)
    bound = 1.0 / (Cin * K) ** 0.5
    Ws = [jax.random.uniform(ks[i], (Cin, Cout, 1, K), jnp.float32, -bound, bound)
          for i in range(3)]
    bs = [jax.random.uniform(ks[3 + i], (Cout,), jnp.float32, -bound, bound)
          for i in range(3)]
    return (Ws[0], bs[0], Ws[1], bs[1], Ws[2], bs[2])


if __name__ == "__main__":
    jax.config.update("jax_default_matmul_precision", "highest")

    configs = [
        # (B, T, N, Cin, Cout, K, stride)
        (2, 8, 16, 4, 6, 3, 2),     # typical use
        (1, 5, 12, 3, 5, 2, 3),     # stride > kernel_size (bias-only time steps)
        (2, 8, 256, 4, 6, 3, 2),    # lane-tiled path: tn=256, 2 parallel grid steps
    ]

    key = jax.random.PRNGKey(0)
    for idx, (B, T, N, Cin, Cout, K, s) in enumerate(configs):
        kp, kx, key = jax.random.split(key, 3)
        params = _make_params(kp, Cin, Cout, K)
        X = jax.random.normal(kx, (B, T, N, Cin), jnp.float32)

        out = jax.block_until_ready(temporal_deconv2(X, params, kernel_size=K, stride=s))
        assert out.shape == (B, (T - 1) * s + K, N, Cout), (idx, out.shape)

        ref = _ref_forward(X, params, K, s)
        err = float(jnp.max(jnp.abs(out - ref)))
        assert err < 1e-4, f"config{idx} mismatch vs reference: {err}"

    print("KERNEL_OK")
</pallas_src>

<mosaic_0001>
module attributes {stable_mosaic.version = 11 : i64} {
  func.func @_gated_deconv_kernel(%arg0: i32, %arg1: memref<32x32xf32, #tpu.memory_space<vmem>>, %arg2: memref<3x102x32xf32, #tpu.memory_space<vmem>>, %arg3: memref<3x102x1xf32, #tpu.memory_space<vmem>>, %arg4: memref<102x32xf32, #tpu.memory_space<vmem>>) attributes {dimension_semantics = [#tpu.dimension_semantics<parallel>], iteration_bounds = array<i64: 1>, scalar_prefetch = 0 : i64, scratch_operands = 0 : i64, tpu.core_type = #tpu.core_type<tc>, window_params = [{transform_indices = @transform_0, window_bounds = array<i64: 32, 32>}, {pipeline_mode = #tpu.pipeline_mode<synchronous>, transform_indices = @transform_1, window_bounds = array<i64: 3, 102, 32>}, {pipeline_mode = #tpu.pipeline_mode<synchronous>, transform_indices = @transform_2, window_bounds = array<i64: 3, 102, 1>}, {transform_indices = @transform_3, window_bounds = array<i64: 102, 32>}]} {
    %c0 = arith.constant 0 : index
    %c0_0 = arith.constant 0 : index
    %0 = vector.load %arg1[%c0, %c0_0] : memref<32x32xf32, #tpu.memory_space<vmem>>, vector<32x32xf32>
    %c0_1 = arith.constant 0 : index
    %c0_2 = arith.constant 0 : index
    %c0_3 = arith.constant 0 : index
    %1 = vector.load %arg2[%c0_1, %c0_2, %c0_3] : memref<3x102x32xf32, #tpu.memory_space<vmem>>, vector<1x102x32xf32>
    %2 = vector.shape_cast %1 : vector<1x102x32xf32> to vector<102x32xf32>
    %cst = arith.constant dense<0.000000e+00> : vector<102x32xf32>
    %3 = tpu.matmul %2, %0, %cst {dimension_numbers = #tpu.dot_dimension_numbers<[1], [0], [0], [1], [0, 0, 1, 1], [], []>, precision = #tpu.contract_precision<fp32>} : vector<102x32xf32>, vector<32x32xf32>, vector<102x32xf32> -> vector<102x32xf32>
    %c0_4 = arith.constant 0 : index
    %c0_5 = arith.constant 0 : index
    %c0_6 = arith.constant 0 : index
    %4 = vector.load %arg3[%c0_4, %c0_5, %c0_6] : memref<3x102x1xf32, #tpu.memory_space<vmem>>, vector<1x102x1xf32>
    %5 = vector.shape_cast %4 : vector<1x102x1xf32> to vector<102x1xf32>
    %6 = vector.broadcast %5 : vector<102x1xf32> to vector<102x32xf32>
    %7 = arith.addf %3, %6 : vector<102x32xf32>
    %c1 = arith.constant 1 : index
    %c0_7 = arith.constant 0 : index
    %c0_8 = arith.constant 0 : index
    %8 = vector.load %arg2[%c1, %c0_7, %c0_8] : memref<3x102x32xf32, #tpu.memory_space<vmem>>, vector<1x102x32xf32>
    %9 = vector.shape_cast %8 : vector<1x102x32xf32> to vector<102x32xf32>
    %cst_9 = arith.constant dense<0.000000e+00> : vector<102x32xf32>
    %10 = tpu.matmul %9, %0, %cst_9 {dimension_numbers = #tpu.dot_dimension_numbers<[1], [0], [0], [1], [0, 0, 1, 1], [], []>, precision = #tpu.contract_precision<fp32>} : vector<102x32xf32>, vector<32x32xf32>, vector<102x32xf32> -> vector<102x32xf32>
    %c1_10 = arith.constant 1 : index
    %c0_11 = arith.constant 0 : index
    %c0_12 = arith.constant 0 : index
    %11 = vector.load %arg3[%c1_10, %c0_11, %c0_12] : memref<3x102x1xf32, #tpu.memory_space<vmem>>, vector<1x102x1xf32>
    %12 = vector.shape_cast %11 : vector<1x102x1xf32> to vector<102x1xf32>
    %13 = vector.broadcast %12 : vector<102x1xf32> to vector<102x32xf32>
    %14 = arith.addf %10, %13 : vector<102x32xf32>
    %c2 = arith.constant 2 : index
    %c0_13 = arith.constant 0 : index
    %c0_14 = arith.constant 0 : index
    %15 = vector.load %arg2[%c2, %c0_13, %c0_14] : memref<3x102x32xf32, #tpu.memory_space<vmem>>, vector<1x102x32xf32>
    %16 = vector.shape_cast %15 : vector<1x102x32xf32> to vector<102x32xf32>
    %cst_15 = arith.constant dense<0.000000e+00> : vector<102x32xf32>
    %17 = tpu.matmul %16, %0, %cst_15 {dimension_numbers = #tpu.dot_dimension_numbers<[1], [0], [0], [1], [0, 0, 1, 1], [], []>, precision = #tpu.contract_precision<fp32>} : vector<102x32xf32>, vector<32x32xf32>, vector<102x32xf32> -> vector<102x32xf32>
    %c2_16 = arith.constant 2 : index
    %c0_17 = arith.constant 0 : index
    %c0_18 = arith.constant 0 : index
    %18 = vector.load %arg3[%c2_16, %c0_17, %c0_18] : memref<3x102x1xf32, #tpu.memory_space<vmem>>, vector<1x102x1xf32>
    %19 = vector.shape_cast %18 : vector<1x102x1xf32> to vector<102x1xf32>
    %20 = vector.broadcast %19 : vector<102x1xf32> to vector<102x32xf32>
    %21 = arith.addf %17, %20 : vector<102x32xf32>
    %22 = arith.negf %14 : vector<102x32xf32>
    %23 = math.exp %22 : vector<102x32xf32>
    %cst_19 = arith.constant 1.000000e+00 : f32
    %24 = vector.broadcast %cst_19 : f32 to vector<102x32xf32>
    %25 = arith.addf %24, %23 : vector<102x32xf32>
    %26 = arith.divf %24, %25 : vector<102x32xf32>
    %27 = arith.mulf %7, %26 : vector<102x32xf32>
    %28 = arith.addf %27, %21 : vector<102x32xf32>
    %cst_20 = arith.constant 0.000000e+00 : f32
    %29 = vector.broadcast %cst_20 : f32 to vector<102x32xf32>
    %30 = arith.maximumf %28, %29 : vector<102x32xf32>
    %c0_21 = arith.constant 0 : index
    %c0_22 = arith.constant 0 : index
    %31 = vector.load %arg4[%c0_21, %c0_22] : memref<102x32xf32, #tpu.memory_space<vmem>>, vector<102x32xf32>
    tpu.vector_store %arg4[%c0_21, %c0_22], %30 {strides = array<i32>} : memref<102x32xf32, #tpu.memory_space<vmem>>, vector<102x32xf32>,
    return
  }
  func.func @transform_0(%arg0: i32) -> (i32, i32) {
    %c0_i32 = arith.constant 0 : i32
    %c0_i32_0 = arith.constant 0 : i32
    return %c0_i32, %arg0 : i32, i32
  }
  func.func @transform_1(%arg0: i32) -> (i32, i32, i32) {
    %c0_i32 = arith.constant 0 : i32
    %c0_i32_0 = arith.constant 0 : i32
    %c0_i32_1 = arith.constant 0 : i32
    %c0_i32_2 = arith.constant 0 : i32
    return %c0_i32, %c0_i32_0, %c0_i32_1 : i32, i32, i32
  }
  func.func @transform_2(%arg0: i32) -> (i32, i32, i32) {
    %c0_i32 = arith.constant 0 : i32
    %c0_i32_0 = arith.constant 0 : i32
    %c0_i32_1 = arith.constant 0 : i32
    %c0_i32_2 = arith.constant 0 : i32
    return %c0_i32, %c0_i32_0, %c0_i32_1 : i32, i32, i32
  }
  func.func @transform_3(%arg0: i32) -> (i32, i32) {
    %c0_i32 = arith.constant 0 : i32
    %c0_i32_0 = arith.constant 0 : i32
    return %c0_i32, %arg0 : i32, i32
  }
}

</mosaic_0001>

<bundles_post_ra>
// kernel: temporal_deconv2.1
= control target key start
LH: loop header
LB: loop body
LE: loop exit
PB: predicated region body
PF: predicated region fallthrough
CT: control target
= control target key end

     0   :  { %vm109_vm0 = vcmask 261120   ;;  %v2517_v3 = vmov 0   ;;  %s3966_s0 = inlined_call_operand.vmem [shape: f32[32,32], index: 0, kind: input, shape index: {}]   ;;  %s3967_s1 = inlined_call_operand.vmem [shape: f32[3,102,32], index: 1, kind: input, shape index: {}]   ;;  %s3968_s2 = inlined_call_operand.vmem [shape: f32[3,102,1], index: 2, kind: input, shape index: {}]   ;;  %s3969_s3 = inlined_call_operand.vmem [shape: f32[102,32], index: 3, kind: output, shape index: {}]  }
   0x1   :  { %v17_v0 = vld [vmem:[%s3966_s0 + $0x18] sm:$0xff]  ;;  %v16_v1 = vld [vmem:[%s3966_s0 + $0x10] sm:$0xff]  ;;  %v15_v2 = vld [vmem:[%s3966_s0 + $0x8] sm:$0xff]  ;;  %2463 = vset.pattern.permute.xlu1 %v2517_v3  ;;  %2462 = vset.pattern.permute.xlu0 %v2517_v3 }
   0x2   :  { %v2547_v4 = vand.u32 4294901760, %v17_v0  ;;  %v2549_v5 = vand.u32 4294901760, %v16_v1  ;;  %v2551_v6 = vand.u32 4294901760, %v15_v2  ;;  %v14_v7 = vld [vmem:[%s3966_s0] sm:$0xff]  ;;  %v25_v8 = vld [vmem:[%s3967_s1 + $0x38] sm:$0xff]  ;;  %v33_v9 = vld [vmem:[%s3968_s2 + $0x10] sm:$0xff]  ;;  %2464 = vset.pattern.permute.xlu2 %v2517_v3 }
   0x3   :  { %v2562_v10 = vand.u32 4294901760, %v14_v7  ;;  %v132_v11 = vsel %vm109_vm0, %v25_v8, 0  ;;  %56 = vperm.xlu1 %2463, %v33_v9   ;;  %v18_v12 = vld [vmem:[%s3967_s1] sm:$0xff]  ;;  %v19_v19 = vld [vmem:[%s3967_s1 + $0x8] sm:$0xff]  ;;  %v20_v40 = vld [vmem:[%s3967_s1 + $0x10] sm:$0xff] }
   0x4   :  { %v26_v13 = vld [vmem:[%s3967_s1 + $0x40] sm:$0xff]  ;;  %2453 = vmatpush.msra.mxu2 %v2547_v4  ;;  %162 = vmatpush.msra.mxu0 %v2547_v4  ;;  %v2574_v14 = vsub.f32 %v17_v0, %v2547_v4  ;;  %v2576_v15 = vand.u32 4294901760, %v132_v11  ;;  %v2579_v16 = vsub.f32 %v16_v1, %v2549_v5  ;;  %v2582_v17 = vsub.f32 %v15_v2, %v2551_v6  ;;  %v27_v39 = vld [vmem:[%s3967_s1 + $0x48] sm:$0xff]  ;;  %v34_v45 = vld [vmem:[%s3968_s2 + $0x18] sm:$0xff] }
   0x5   :  { %v31_v18 = vld [vmem:[%s3968_s2] sm:$0xff]  ;;  %v2591_v20 = vsub.f32 %v14_v7, %v2562_v10  ;;  %v111_v21 = vsel %vm109_vm0, %v18_v12, 0  ;;  %v135_v22 = vsel %vm109_vm0, %v26_v13, 0  ;;  %v114_v23 = vsel %vm109_vm0, %v19_v19, 0  ;;  %v28_v52 = vld [vmem:[%s3967_s1 + $0x50] sm:$0xff]  ;;  %v32_v56 = vld [vmem:[%s3968_s2 + $0x8] sm:$0xff] }
   0x6   :  { %46 = vperm.xlu0 %2462, %v31_v18   ;;  %2454 = vmatpush.msra.mxu2 %v2549_v5  ;;  %v2598_v24 = vand.u32 4294901760, %v2574_v14  ;;  %v2601_v25 = vsub.f32 %v132_v11, %v2576_v15  ;;  %v2605_v26 = vand.u32 4294901760, %v2579_v16  ;;  %v2608_v27 = vand.u32 4294901760, %v2582_v17  ;;  %v21_v63 = vld [vmem:[%s3967_s1 + $0x18] sm:$0xff]  ;;  %v37_v18 = vld [vmem:[%s3968_s2 + $0x30] sm:$0xff] }
   0x7   :  { %164 = vmatpush.msra.mxu0 %v2549_v5  ;;  %v2611_v28 = vand.u32 4294901760, %v2591_v20  ;;  %v2613_v29 = vand.u32 4294901760, %v111_v21  ;;  %v2615_v30 = vand.u32 4294901760, %v135_v22  ;;  %v2617_v31 = vand.u32 4294901760, %v114_v23  ;;  %v38_v7 = vld [vmem:[%s3968_s2 + $0x38] sm:$0xff] }
   0x8   :  { %2455 = vmatpush.msra.mxu2 %v2551_v6  ;;  %v289_v32 = vsub.f32 %v2574_v14, %v2598_v24  ;;  %v227_v33 = vand.u32 4294901760, %v2601_v25  ;;  %v295_v34 = vsub.f32 %v2579_v16, %v2605_v26  ;;  %v301_v35 = vsub.f32 %v2582_v17, %v2608_v27  ;;  %v29_v11 = vld [vmem:[%s3967_s1 + $0x58] sm:$0xff] }
   0x9   :  { %166 = vmatpush.msra.mxu0 %v2551_v6  ;;  %v2629_v36 = vsub.f32 %v111_v21, %v2613_v29  ;;  %v2632_v37 = vsub.f32 %v135_v22, %v2615_v30  ;;  %v2635_v38 = vsub.f32 %v114_v23, %v2617_v31  ;;  %v307_v44 = vsub.f32 %v2591_v20, %v2611_v28 }
   0xa   :  { %2456 = vmatpush.msra.mxu2 %v2562_v10  ;;  %v2644_v41 = vand.u32 4294901760, %v289_v32  ;;  %v228_v42 = vsub.f32 %v2601_v25, %v227_v33  ;;  %v2649_v43 = vand.u32 4294901760, %v295_v34  ;;  %v2663_v49 = vand.u32 4294901760, %v301_v35  ;;  %v35_v32 = vld [vmem:[%s3968_s2 + $0x20] sm:$0xff] }
   0xb   :  { %168 = vmatpush.msra.mxu0 %v2562_v10  ;;  %v171_v46 = vand.u32 4294901760, %v2629_v36  ;;  %v235_v47 = vand.u32 4294901760, %v2632_v37  ;;  %v138_v50 = vsel %vm109_vm0, %v27_v39, 0  ;;  %v117_v51 = vsel %vm109_vm0, %v20_v40, 0  ;;  %61 = vperm.xlu1 %2463, %v34_v45   ;;  %v22_v34 = vld [vmem:[%s3967_s1 + $0x20] sm:$0xff] }
   0xc   :  { %377 = vmatpush.msrb.mxu2 %v2574_v14  ;;  %2457 = vmatpush.msra.mxu3 %v2644_v41  ;;  %v229_v48 = vand.u32 4294901760, %v228_v42  ;;  %v179_v54 = vand.u32 4294901760, %v2635_v38  ;;  %v2674_v55 = vand.u32 4294901760, %v138_v50  ;;  %v2681_v57 = vand.u32 4294901760, %v307_v44 }
   0xd   :  { %567 = vmatpush.msrb.mxu0 %v2598_v24  ;;  %291 = vmatpush.msra.mxu1 %v2644_v41  ;;  %v172_v53 = vsub.f32 %v2629_v36, %v171_v46  ;;  %v236_v58 = vsub.f32 %v2632_v37, %v235_v47  ;;  %v2686_v59 = vand.u32 4294901760, %v117_v51  ;;  %v141_v62 = vsel %vm109_vm0, %v28_v52, 0 }
   0xe   :  { %380 = vmatpush.msrb.mxu2 %v2579_v16  ;;  %2458 = vmatpush.msra.mxu3 %v2649_v43  ;;  %v2690_v61 = vsub.f32 %v138_v50, %v2674_v55  ;;  %v180_v0 = vsub.f32 %v2635_v38, %v179_v54  ;;  %v2710_v8 = vand.u32 4294901760, %v141_v62  ;;  %v120_v9 = vsel %vm109_vm0, %v21_v63, 0  ;;  %v30_v50 = vld [vmem:[%s3967_s1 + $0x60] sm:$0x3f]  ;;  %v36_v63 = vld [vmem:[%s3968_s2 + $0x28] sm:$0xff] }
   0xf   :  { %230 = vmatmul.f32.vlgmr.msra.gmra.mxu2 %v229_v48  ;;  %297 = vmatpush.msra.mxu1 %v2649_v43  ;;  %v173_v60 = vand.u32 4294901760, %v172_v53  ;;  %v2703_v1 = vsub.f32 %v117_v51, %v2686_v59  ;;  %v237_v2 = vand.u32 4294901760, %v236_v58  ;;  %v2726_v19 = vand.u32 4294901760, %v120_v9  ;;  %v41_v48 = vld [vmem:[%s3968_s2 + $0x50] sm:$0xff]  ;;  %v40_v53 = vld [vmem:[%s3968_s2 + $0x48] sm:$0xff] }
  0x10   :  { %571 = vmatpush.msrb.mxu0 %v2605_v26  ;;  %2459 = vmatpush.msra.mxu3 %v2663_v49  ;;  %v243_v3 = vand.u32 4294901760, %v2690_v61  ;;  %v181_v12 = vand.u32 4294901760, %v180_v0  ;;  %v2733_v22 = vsub.f32 %v141_v62, %v2710_v8  ;;  %v144_v23 = vsel %vm109_vm0, %v29_v11, 0  ;;  %v23_v0 = vld [vmem:[%s3967_s1 + $0x28] sm:$0xff] }
  0x11   :  { %51 = vperm.xlu0 %2462, %v32_v56   ;;  %303 = vmatpush.msra.mxu1 %v2663_v49  ;;  %v187_v13 = vand.u32 4294901760, %v2703_v1  ;;  %v2749_v39 = vsub.f32 %v120_v9, %v2726_v19  ;;  %v2753_v44 = vand.u32 4294901760, %v144_v23  ;;  %v123_v45 = vsel %vm109_vm0, %v22_v34, 0 }
  0x12   :  { %174 = vmatmul.f32.vlgmr.msra.gmra.mxu0 %v173_v60  ;;  %2460 = vmatpush.msra.mxu3 %v2681_v57  ;;  %v244_v21 = vsub.f32 %v2690_v61, %v243_v3  ;;  %v251_v42 = vand.u32 4294901760, %v2733_v22  ;;  %v2771_v56 = vand.u32 4294901760, %v123_v45  ;;  %v147_v62 = vsel %vm109_vm0, %v30_v50, 0 }
  0x13   :  { %383 = vmatpush.msrb.mxu2 %v2582_v17  ;;  %339 = vmatmul.f32.vlgmr.msra.gmra.mxu3 %v2576_v15  ;;  %v188_v35 = vsub.f32 %v2703_v1, %v187_v13  ;;  %v195_v52 = vand.u32 4294901760, %v2749_v39  ;;  %v2778_v60 = vsub.f32 %v144_v23, %v2753_v44 }
  0x14   :  { %309 = vmatpush.msra.mxu1 %v2681_v57  ;;  %466 = vmatpush.msrb.mxu3 %v2547_v4  ;;  %v245_v40 = vand.u32 4294901760, %v244_v21  ;;  %v252_v58 = vsub.f32 %v2733_v22, %v251_v42 }
  0x15   :  { %311 = vmatmul.f32.vlgmr.msra.gmra.mxu1 %v2613_v29  ;;  %81 = vperm.xlu1 %2463, %v38_v7   ;;  %v189_v51 = vand.u32 4294901760, %v188_v35  ;;  %v2795_v7 = vsub.f32 %v123_v45, %v2771_v56  ;;  %v259_v11 = vand.u32 4294901760, %v2778_v60  ;;  %v39_v45 = vld [vmem:[%s3968_s2 + $0x40] sm:$0xff] }
  0x16   :  { %646 = vmatpush.msrb.mxu1 %v2547_v4  ;;  %468 = vmatpush.msrb.mxu3 %v2549_v5  ;;  %v253_v9 = vand.u32 4294901760, %v252_v58 }
  0x17   :  { %238 = vmatmul.f32.gmra.mxu2 %v237_v2  ;;  %575 = vmatpush.msrb.mxu0 %v2608_v27  ;;  %v196_v2 = vsub.f32 %v2749_v39, %v195_v52  ;;  %v203_v23 = vand.u32 4294901760, %v2795_v7  ;;  %v260_v34 = vsub.f32 %v2778_v60, %v259_v11 }
  0x18   :  { %648 = vmatpush.msrb.mxu1 %v2549_v5  ;;  %470 = vmatpush.msrb.mxu3 %v2551_v6 }
  0x19   :  { %76 = vperm.xlu0 %2462, %v37_v18   ;;  %66 = vperm.xlu2 %2464, %v35_v32   ;;  %v126_v18 = vsel %vm109_vm0, %v23_v0, 0  ;;  %v197_v21 = vand.u32 4294901760, %v196_v2  ;;  %v204_v50 = vsub.f32 %v2795_v7, %v203_v23 }
  0x1a   :  { %182 = vmatmul.f32.gmra.mxu0 %v181_v12  ;;  %650 = vmatpush.msrb.mxu1 %v2551_v6  ;;  %v2799_v12 = vand.u32 4294901760, %v147_v62  ;;  %v2808_v32 = vand.u32 4294901760, %v126_v18 }
  0x1b   :  { %386 = vmatpush.msrb.mxu2 %v2591_v20  ;;  %343 = vmatmul.f32.gmra.mxu3 %v2615_v30 }
  0x1c   :  { %579 = vmatpush.msrb.mxu0 %v2611_v28  ;;  %472 = vmatpush.msrb.mxu3 %v2562_v10  ;;  %v2816_v35 = vsub.f32 %v147_v62, %v2799_v12 }
  0x1d   :  { %315 = vmatmul.f32.gmra.mxu1 %v2617_v31  ;;  %96 = vperm.xlu1 %2463, %v41_v48   ;;  %v24_v48 = vld [vmem:[%s3967_s1 + $0x30] sm:$0xff] }
  0x1e   :  { %652 = vmatpush.msrb.mxu1 %v2562_v10  ;;  %980 = vmatpush.msra.mxu3 %v2644_v41  ;;  %v267_v58 = vand.u32 4294901760, %v2816_v35  ;;  %v129_v62 = vsel %vm109_vm0, %v24_v48, 0  ;;  %v42_v48 = vld [vmem:[%s3968_s2 + $0x58] sm:$0xff] }
  0x1f   :  { %246 = vmatmul.f32.gmra.mxu2 %v245_v40  ;;  %1066 = vmatpush.msra.mxu0 %v2574_v14  ;;  %v43_v40 = vld [vmem:[%s3968_s2 + $0x60] sm:$0x3f]  ;;  %v2844_v2 = vand.u32 4294901760, %v129_v62 }
  0x20   :  { %851 = vmatpush.msra.mxu2 %v2547_v4  ;;  %1155 = vmatpush.msra.mxu1 %v2547_v4 }
  0x21   :  { %91 = vperm.xlu0 %2462, %v40_v53   ;;  %71 = vperm.xlu2 %2464, %v36_v63   ;;  %v261_v53 = vand.u32 4294901760, %v260_v34  ;;  %v205_v63 = vand.u32 4294901760, %v204_v50 }
  0x22   :  { %190 = vmatmul.f32.gmra.mxu0 %v189_v51  ;;  %853 = vmatpush.msra.mxu2 %v2549_v5  ;;  %v2835_v51 = vsub.f32 %v126_v18, %v2808_v32 }
  0x23   :  { %986 = vmatpush.msra.mxu3 %v2649_v43  ;;  %1069 = vmatpush.msra.mxu0 %v2579_v16 }
  0x24   :  { %347 = vmatmul.f32.gmra.mxu3 %v2674_v55  ;;  %855 = vmatpush.msra.mxu2 %v2551_v6  ;;  %v211_v0 = vand.u32 4294901760, %v2835_v51 }
  0x25   :  { %319 = vmatmul.f32.gmra.mxu1 %v2686_v59  ;;  %992 = vmatpush.msra.mxu3 %v2663_v49 }
  0x26   :  { %1157 = vmatpush.msra.mxu1 %v2549_v5  ;;  %1072 = vmatpush.msra.mxu0 %v2582_v17  ;;  %v212_v18 = vsub.f32 %v2835_v51, %v211_v0 }
  0x27   :  { %254 = vmatmul.f32.gmra.mxu2 %v253_v9  ;;  %998 = vmatpush.msra.mxu3 %v2681_v57  ;;  %v268_v9 = vsub.f32 %v2816_v35, %v267_v58 }
  0x28   :  { %1159 = vmatpush.msra.mxu1 %v2551_v6  ;;  %857 = vmatpush.msra.mxu2 %v2562_v10 }
  0x29   :  { %106 = vperm.xlu0 %2462, %v43_v40   ;;  %86 = vperm.xlu2 %2464, %v39_v45   ;;  %v269_v34 = vand.u32 4294901760, %v268_v9  ;;  %v213_v40 = vand.u32 4294901760, %v212_v18 }
  0x2a   :  { %198 = vmatmul.f32.gmra.mxu0 %v197_v21  ;;  %1161 = vmatpush.msra.mxu1 %v2562_v10  ;;  %v218_v21 = vsub.f32 %v129_v62, %v2844_v2 }
  0x2b   :  { %1075 = vmatpush.msra.mxu0 %v2591_v20 }
  0x2c   :  { %351 = vmatmul.f32.gmra.mxu3 %v2710_v8  ;;  %v219_v45 = vand.u32 4294901760, %v218_v21 }
  0x2d   :  { %323 = vmatmul.f32.gmra.mxu1 %v2726_v19 }
  0x2e   :  { %v220_v50 = vsub.f32 %v218_v21, %v219_v45 }
  0x2f   :  { %262 = vmatmul.f32.gmra.mxu2 %v261_v53 }
  0x30   :  { %v221_v53 = vand.u32 4294901760, %v220_v50 }
  0x31   :  { %101 = vperm.xlu2 %2464, %v42_v48  }
  0x32   :  { %206 = vmatmul.f32.gmra.mxu0 %v205_v63 }
  0x34   :  { %355 = vmatmul.f32.gmra.mxu3 %v2753_v44 }
  0x35   :  { %327 = vmatmul.f32.gmra.mxu1 %v2771_v56 }
  0x37   :  { %270 = vmatmul.f32.gmra.mxu2 %v269_v34  ;;  %v2391_v34 = vld [vmem:[%s3967_s1 + $0x80] sm:$0xff] }
  0x3a   :  { %214 = vmatmul.f32.gmra.mxu0 %v213_v40 }
  0x3c   :  { %359 = vmatmul.f32.gmra.mxu3 %v2799_v12 }
  0x3d   :  { %331 = vmatmul.f32.gmra.mxu1 %v2808_v32 }
  0x3f   :  { %389 = vmatmul.f32.vlgmr.msrb.gmra.mxu2 %v2629_v36 }
  0x40   :  { %1256 = vmatpush.msrb.mxu2 %v2598_v24 }
  0x42   :  { %222 = vmatmul.f32.gmra.mxu0 %v221_v53  ;;  %1260 = vmatpush.msrb.mxu2 %v2605_v26 }
  0x44   :  { %476 = vmatmul.f32.vlgmr.msrb.gmra.mxu3 %v171_v46  ;;  %1264 = vmatpush.msrb.mxu2 %v2608_v27 }
  0x45   :  { %335 = vmatmul.f32.gmra.mxu1 %v2844_v2  ;;  %1335 = vmatpush.msrb.mxu3 %v2547_v4 }
  0x46   :  { %1268 = vmatpush.msrb.mxu2 %v2611_v28 }
  0x47   :  { %394 = vmatmul.f32.gmra.mxu2 %v2635_v38  ;;  %1337 = vmatpush.msrb.mxu3 %v2549_v5 }
  0x49   :  { %1339 = vmatpush.msrb.mxu3 %v2551_v6 }
  0x4a   :  { %581 = vmatmul.f32.vlgmr.msrb.gmra.mxu0 %v2613_v29 }
  0x4b   :  { %1540 = vmatpush.msrb.mxu0 %v2547_v4  ;;  %1341 = vmatpush.msrb.mxu3 %v2562_v10 }
  0x4c   :  { %482 = vmatmul.f32.gmra.mxu3 %v179_v54  ;;  %v2389_v54 = vld [vmem:[%s3967_s1 + $0x70] sm:$0xff] }
  0x4d   :  { %654 = vmatmul.f32.vlgmr.msrb.gmra.mxu1 %v2613_v29  ;;  %1542 = vmatpush.msrb.mxu0 %v2549_v5 }
  0x4e   :  { %1669 = vmatpush.msrb.mxu1 %v2644_v41 }
  0x4f   :  { %399 = vmatmul.f32.gmra.mxu2 %v2703_v1  ;;  %1544 = vmatpush.msrb.mxu0 %v2551_v6 }
  0x50   :  { %1675 = vmatpush.msrb.mxu1 %v2649_v43 }
  0x51   :  { %1546 = vmatpush.msrb.mxu0 %v2562_v10 }
  0x52   :  { %585 = vmatmul.f32.gmra.mxu0 %v2617_v31  ;;  %1681 = vmatpush.msrb.mxu1 %v2663_v49 }
  0x54   :  { %488 = vmatmul.f32.gmra.mxu3 %v187_v13  ;;  %1687 = vmatpush.msrb.mxu1 %v2681_v57 }
  0x55   :  { %658 = vmatmul.f32.gmra.mxu1 %v2617_v31 }
  0x57   :  { %404 = vmatmul.f32.gmra.mxu2 %v2749_v39  ;;  %v2401_v39 = vld [vmem:[%s3968_s2 + $0x68] sm:$0xff] }
  0x58   :  { %736 = vperm.xlu1 %2463, %v2401_v39  }
  0x5a   :  { %589 = vmatmul.f32.gmra.mxu0 %v2686_v59 }
  0x5c   :  { %494 = vmatmul.f32.gmra.mxu3 %v195_v52 }
  0x5d   :  { %662 = vmatmul.f32.gmra.mxu1 %v2686_v59 }
  0x5f   :  { %409 = vmatmul.f32.gmra.mxu2 %v2795_v7  ;;  %v2390_v7 = vld [vmem:[%s3967_s1 + $0x78] sm:$0xff] }
  0x62   :  { %593 = vmatmul.f32.gmra.mxu0 %v2726_v19 }
  0x64   :  { %500 = vmatmul.f32.gmra.mxu3 %v203_v23 }
  0x65   :  { %666 = vmatmul.f32.gmra.mxu1 %v2726_v19  ;;  %v803_v19 = vsel %vm109_vm0, %v2389_v54, 0  ;;  %v2392_v54 = vld [vmem:[%s3967_s1 + $0x88] sm:$0xff] }
  0x67   :  { %414 = vmatmul.f32.gmra.mxu2 %v2835_v51 }
  0x6a   :  { %597 = vmatmul.f32.gmra.mxu0 %v2771_v56 }
  0x6c   :  { %506 = vmatmul.f32.gmra.mxu3 %v211_v0 }
  0x6d   :  { %670 = vmatmul.f32.gmra.mxu1 %v2771_v56  ;;  %v2966_v56 = vand.u32 4294901760, %v803_v19 }
  0x6f   :  { %419 = vmatmul.f32.gmra.mxu2 %v218_v21  ;;  %v2981_v62 = vsub.f32 %v803_v19, %v2966_v56 }
  0x71   :  { %v868_v18 = vand.u32 4294901760, %v2981_v62 }
  0x72   :  { %601 = vmatmul.f32.gmra.mxu0 %v2808_v32 }
  0x73   :  { %v2916_v36 = vpop.permute.xlu2 %66  ;;  %v869_v48 = vsub.f32 %v2981_v62, %v868_v18 }
  0x74   :  { %512 = vmatmul.f32.gmra.mxu3 %v219_v45 }
  0x75   :  { %674 = vmatmul.f32.gmra.mxu1 %v2808_v32  ;;  %v2907_v29 = vpop.permute.xlu1 %56 }
  0x77   :  { %424 = vmatmul.f32.gmra.mxu2 %v2601_v25 }
  0x78   :  { %v2912_v31 = vpop.permute.xlu0 %46 }
  0x7a   :  { %605 = vmatmul.f32.gmra.mxu0 %v2844_v2 }
  0x7c   :  { %518 = vmatmul.f32.gmra.mxu3 %v227_v33  ;;  %v2388_v33 = vld [vmem:[%s3967_s1 + $0x68] sm:$0xff] }
  0x7d   :  { %678 = vmatmul.f32.gmra.mxu1 %v2844_v2  ;;  %v2919_v38 = vpop.permute.xlu1 %61  ;;  %v800_v43 = vsel %vm109_vm0, %v2388_v33, 0 }
  0x7f   :  { %429 = vmatmul.f32.gmra.mxu2 %v2632_v37  ;;  %v2931_v37 = vpop.permute.xlu2 %71 }
  0x82   :  { %609 = vmatmul.f32.gmra.mxu0 %v2576_v15 }
  0x83   :  { %v2925_v25 = vpop.permute.xlu0 %51 }
  0x84   :  { %524 = vmatmul.f32.gmra.mxu3 %v235_v47 }
  0x85   :  { %682 = vmatmul.f32.gmra.mxu1 %v2576_v15 }
  0x87   :  { %434 = vmatmul.f32.gmra.mxu2 %v2690_v61  ;;  %v82_v41 = vpop.permute.xlu1 %81  ;;  %v87_v13 = vpop.permute.xlu2 %86 }
  0x8a   :  { %613 = vmatmul.f32.gmra.mxu0 %v2615_v30 }
  0x8b   :  { %v2948_v57 = vpop.permute.xlu0 %76 }
  0x8c   :  { %530 = vmatmul.f32.gmra.mxu3 %v243_v3 }
  0x8d   :  { %686 = vmatmul.f32.gmra.mxu1 %v2615_v30  ;;  %v2940_v30 = vand.u32 4294901760, %v800_v43 }
  0x8f   :  { %439 = vmatmul.f32.gmra.mxu2 %v2733_v22  ;;  %v2934_v15 = vpop.f32.mrf.mxu0  ;;  %v2954_v1 = vsub.f32 %v800_v43, %v2940_v30 }
  0x91   :  { %v860_v52 = vand.u32 4294901760, %v2954_v1 }
  0x92   :  { %v231_v46 = vpop.f32.mrf.mxu2  ;;  %v2937_v47 = vpop.f32.mrf.mxu1  ;;  %617 = vmatmul.f32.gmra.mxu0 %v2674_v55 }
  0x93   :  { %v232_v49 = vadd.f32 %v231_v46, %v82_v41  ;;  %v861_v51 = vsub.f32 %v2954_v1, %v860_v52  ;;  %v870_v41 = vand.u32 4294901760, %v869_v48 }
  0x94   :  { %536 = vmatmul.f32.gmra.mxu3 %v251_v42 }
  0x95   :  { %690 = vmatmul.f32.gmra.mxu1 %v2674_v55  ;;  %v862_v9 = vand.u32 4294901760, %v861_v51 }
  0x96   :  { %v340_v59 = vpop.f32.mrf.mxu3 }
  0x97   :  { %444 = vmatmul.f32.gmra.mxu2 %v2778_v60  ;;  %v2951_v61 = vpop.f32.mrf.mxu0  ;;  %v2956_v3 = vadd.f32 %v340_v59, %v232_v49  ;;  %v2403_v49 = vld [vmem:[%s3968_s2 + $0x78] sm:$0xff] }
  0x98   :  { %746 = vperm.xlu0 %2462, %v2403_v49  }
  0x9a   :  { %v239_v55 = vpop.f32.mrf.mxu2  ;;  %v2959_v22 = vpop.f32.mrf.mxu1  ;;  %621 = vmatmul.f32.gmra.mxu0 %v2710_v8 }
  0x9b   :  { %v240_v42 = vadd.f32 %v239_v55, %v87_v13  ;;  %v812_v55 = vsel %vm109_vm0, %v2392_v54, 0 }
  0x9c   :  { %542 = vmatmul.f32.gmra.mxu3 %v259_v11  ;;  %v92_v11 = vpop.permute.xlu0 %91  ;;  %v3045_v51 = vand.u32 4294901760, %v812_v55 }
  0x9d   :  { %694 = vmatmul.f32.gmra.mxu1 %v2710_v8  ;;  %v806_v8 = vsel %vm109_vm0, %v2390_v7, 0 }
  0x9e   :  { %v344_v23 = vpop.f32.mrf.mxu3  ;;  %v2990_v21 = vand.u32 4294901760, %v806_v8 }
  0x9f   :  { %449 = vmatmul.f32.gmra.mxu2 %v2816_v35  ;;  %v2975_v32 = vpop.f32.mrf.mxu0  ;;  %v2983_v60 = vadd.f32 %v344_v23, %v240_v42  ;;  %v809_v35 = vsel %vm109_vm0, %v2391_v34, 0 }
  0xa0   :  { %v3004_v50 = vsub.f32 %v806_v8, %v2990_v21  ;;  %v3015_v46 = vand.u32 4294901760, %v809_v35  ;;  %v2393_v8 = vld [vmem:[%s3967_s1 + $0x90] sm:$0xff] }
  0xa2   :  { %v247_v63 = vpop.f32.mrf.mxu2  ;;  %v2986_v0 = vpop.f32.mrf.mxu1  ;;  %625 = vmatmul.f32.gmra.mxu0 %v2753_v44  ;;  %v876_v43 = vand.u32 4294901760, %v3004_v50  ;;  %v3033_v19 = vsub.f32 %v809_v35, %v3015_v46  ;;  %v2402_v35 = vld [vmem:[%s3968_s2 + $0x70] sm:$0xff] }
  0xa3   :  { %v248_v2 = vadd.f32 %v247_v63, %v92_v11  ;;  %v2404_v11 = vld [vmem:[%s3968_s2 + $0x80] sm:$0xff]  ;;  %741 = vperm.xlu2 %2464, %v2402_v35   ;;  %v2396_v35 = vld [vmem:[%s3967_s1 + $0xa8] sm:$0xff] }
  0xa4   :  { %548 = vmatmul.f32.gmra.mxu3 %v267_v58  ;;  %v877_v13 = vsub.f32 %v3004_v50, %v876_v43  ;;  %v884_v23 = vand.u32 4294901760, %v3033_v19  ;;  %751 = vperm.xlu1 %2463, %v2404_v11  }
  0xa5   :  { %698 = vmatmul.f32.gmra.mxu1 %v2753_v44  ;;  %v97_v44 = vpop.permute.xlu1 %96 }
  0xa6   :  { %v878_v7 = vand.u32 4294901760, %v877_v13 }
  0xa7   :  { %863 = vmatmul.f32.vlgmr.msra.gmra.mxu2 %v862_v9  ;;  %v348_v40 = vpop.f32.mrf.mxu3  ;;  %v2998_v45 = vpop.f32.mrf.mxu0  ;;  %v3066_v9 = vsub.f32 %v812_v55, %v3045_v51  ;;  %v2406_v55 = vld [vmem:[%s3968_s2 + $0x90] sm:$0xff] }
  0xa8   :  { %v3006_v53 = vadd.f32 %v348_v40, %v248_v2  ;;  %1755 = vmatpush.msra.mxu2 %v2574_v14  ;;  %v885_v2 = vsub.f32 %v3033_v19, %v884_v23  ;;  %761 = vperm.xlu0 %2462, %v2406_v55  }
  0xa9   :  { %v892_v48 = vand.u32 4294901760, %v3066_v9 }
  0xaa   :  { %v255_v58 = vpop.f32.mrf.mxu2  ;;  %v3010_v33 = vpop.f32.mrf.mxu1  ;;  %629 = vmatmul.f32.gmra.mxu0 %v2799_v12  ;;  %1758 = vmatpush.msra.mxu2 %v2579_v16  ;;  %v886_v40 = vand.u32 4294901760, %v885_v2 }
  0xab   :  { %v256_v14 = vadd.f32 %v255_v58, %v97_v44  ;;  %v893_v58 = vsub.f32 %v3066_v9, %v892_v48 }
  0xac   :  { %1000 = vmatmul.f32.vlgmr.msra.gmra.mxu3 %v2940_v30  ;;  %1761 = vmatpush.msra.mxu2 %v2582_v17  ;;  %v102_v17 = vpop.permute.xlu2 %101 }
  0xad   :  { %702 = vmatmul.f32.gmra.mxu1 %v2799_v12  ;;  %1844 = vmatpush.msra.mxu3 %v2547_v4  ;;  %v894_v54 = vand.u32 4294901760, %v893_v58 }
  0xae   :  { %1764 = vmatpush.msra.mxu2 %v2591_v20 }
  0xaf   :  { %871 = vmatmul.f32.gmra.mxu2 %v870_v41  ;;  %v352_v16 = vpop.f32.mrf.mxu3  ;;  %v3027_v59 = vpop.f32.mrf.mxu0  ;;  %1846 = vmatpush.msra.mxu3 %v2549_v5 }
  0xb0   :  { %v3036_v12 = vadd.f32 %v352_v16, %v256_v14 }
  0xb1   :  { %1848 = vmatpush.msra.mxu3 %v2551_v6 }
  0xb2   :  { %v263_v39 = vpop.f32.mrf.mxu2  ;;  %v3041_v42 = vpop.f32.mrf.mxu1  ;;  %1078 = vmatmul.f32.vlgmr.msra.gmra.mxu0 %v2954_v1 }
  0xb3   :  { %1945 = vmatpush.msra.mxu0 %v2598_v24  ;;  %1850 = vmatpush.msra.mxu3 %v2562_v10  ;;  %v264_v20 = vadd.f32 %v263_v39, %v102_v17 }
  0xb4   :  { %1004 = vmatmul.f32.gmra.mxu3 %v2966_v56 }
  0xb5   :  { %1165 = vmatmul.f32.vlgmr.msra.gmra.mxu1 %v860_v52  ;;  %1949 = vmatpush.msra.mxu0 %v2605_v26  ;;  %v815_v52 = vsel %vm109_vm0, %v2393_v8, 0 }
  0xb6   :  { %2024 = vmatpush.msra.mxu1 %v2547_v4  ;;  %v107_v4 = vpop.permute.xlu0 %106 }
  0xb7   :  { %879 = vmatmul.f32.gmra.mxu2 %v878_v7  ;;  %v356_v63 = vpop.f32.mrf.mxu3  ;;  %v3060_v24 = vpop.f32.mrf.mxu0  ;;  %1953 = vmatpush.msra.mxu0 %v2608_v27  ;;  %v3079_v27 = vand.u32 4294901760, %v815_v52 }
  0xb8   :  { %v3069_v1 = vadd.f32 %v356_v63, %v264_v20  ;;  %2026 = vmatpush.msra.mxu1 %v2549_v5  ;;  %v184_v20 = vadd.f32 %v2951_v61, %v2925_v25  ;;  %v192_v61 = vadd.f32 %v2975_v32, %v2907_v29  ;;  %v824_v29 = vsel %vm109_vm0, %v2396_v35, 0  ;;  %v2398_v35 = vld [vmem:[%s3967_s1 + $0xb8] sm:$0xff] }
  0xb9   :  { %1957 = vmatpush.msra.mxu0 %v2611_v28  ;;  %v3097_v41 = vsub.f32 %v815_v52, %v3079_v27 }
  0xba   :  { %v271_v26 = vpop.f32.mrf.mxu2  ;;  %v3074_v34 = vpop.f32.mrf.mxu1  ;;  %1083 = vmatmul.f32.gmra.mxu0 %v2981_v62  ;;  %2028 = vmatpush.msra.mxu1 %v2551_v6  ;;  %v2394_v6 = vld [vmem:[%s3967_s1 + $0x98] sm:$0xff]  ;;  %v176_v62 = vadd.f32 %v2934_v15, %v2912_v31  ;;  %v2395_v15 = vld [vmem:[%s3967_s1 + $0xa0] sm:$0xff]  ;;  %v317_v25 = vadd.f32 %v2959_v22, %v184_v20  ;;  %v321_v32 = vadd.f32 %v2986_v0, %v192_v61  ;;  %v2409_v61 = vld [vmem:[%s3968_s2 + $0xa8] sm:$0xff] }
  0xbb   :  { %v272_v5 = vadd.f32 %v271_v26, %v107_v4  ;;  %v818_v49 = vsel %vm109_vm0, %v2394_v6, 0  ;;  %v900_v16 = vand.u32 4294901760, %v3097_v41  ;;  %v200_v0 = vadd.f32 %v2998_v45, %v2919_v38  ;;  %776 = vperm.xlu0 %2462, %v2409_v61   ;;  %v2408_v61 = vld [vmem:[%s3968_s2 + $0xa0] sm:$0xff] }
  0xbc   :  { %1008 = vmatmul.f32.gmra.mxu3 %v2990_v21  ;;  %2030 = vmatpush.msra.mxu1 %v2562_v10  ;;  %v3108_v13 = vand.u32 4294901760, %v818_v49  ;;  %v313_v31 = vadd.f32 %v2937_v47, %v176_v62 }
  0xbd   :  { %1171 = vmatmul.f32.gmra.mxu1 %v868_v18  ;;  %v901_v11 = vsub.f32 %v3097_v41, %v900_v16  ;;  %v325_v45 = vadd.f32 %v3010_v33, %v200_v0  ;;  %v208_v33 = vadd.f32 %v3027_v59, %v2916_v36  ;;  %v830_v36 = vsel %vm109_vm0, %v2398_v35, 0  ;;  %v2399_v0 = vld [vmem:[%s3967_s1 + $0xc0] sm:$0xff] }
  0xbe   :  { %v3124_v47 = vsub.f32 %v818_v49, %v3108_v13 }
  0xbf   :  { %887 = vmatmul.f32.gmra.mxu2 %v886_v40  ;;  %v360_v28 = vpop.f32.mrf.mxu3  ;;  %v3091_v44 = vpop.f32.mrf.mxu0  ;;  %v902_v52 = vand.u32 4294901760, %v901_v11  ;;  %v2407_v40 = vld [vmem:[%s3968_s2 + $0x98] sm:$0xff]  ;;  %v329_v59 = vadd.f32 %v3041_v42, %v208_v33  ;;  %v216_v42 = vadd.f32 %v3060_v24, %v2931_v37  ;;  %v833_v37 = vsel %vm109_vm0, %v2399_v0, 0  ;;  %v2400_v33 = vld [vmem:[%s3967_s1 + $0xc8] sm:$0x3f] }
  0xc0   :  { %v3101_v18 = vadd.f32 %v360_v28, %v272_v5  ;;  %v908_v4 = vand.u32 4294901760, %v3124_v47  ;;  %766 = vperm.xlu1 %2463, %v2407_v40  }
  0xc1   :  { %v333_v24 = vadd.f32 %v3074_v34, %v216_v42  ;;  %v224_v34 = vadd.f32 %v3091_v44, %v2948_v57 }
  0xc2   :  { %v390_v14 = vpop.f32.mrf.mxu2  ;;  %v3104_v10 = vpop.f32.mrf.mxu1  ;;  %1088 = vmatmul.f32.gmra.mxu0 %v3004_v50  ;;  %v909_v22 = vsub.f32 %v3124_v47, %v908_v4 }
  0xc3   :  { %v391_v17 = vadd.f32 %v390_v14, %v313_v31  ;;  %v3163_v31 = vand.u32 4294901760, %v824_v29  ;;  %v337_v57 = vadd.f32 %v3104_v10, %v224_v34 }
  0xc4   :  { %1012 = vmatmul.f32.gmra.mxu3 %v3015_v46 }
  0xc5   :  { %1177 = vmatmul.f32.gmra.mxu1 %v876_v43  ;;  %v821_v43 = vsel %vm109_vm0, %v2395_v15, 0  ;;  %v2405_v15 = vld [vmem:[%s3968_s2 + $0x88] sm:$0xff]  ;;  %v3180_v20 = vsub.f32 %v824_v29, %v3163_v31 }
  0xc6   :  { %v3135_v26 = vand.u32 4294901760, %v821_v43  ;;  %756 = vperm.xlu2 %2464, %v2405_v15   ;;  %v2410_v15 = vld [vmem:[%s3968_s2 + $0xb0] sm:$0xff] }
  0xc7   :  { %895 = vmatmul.f32.gmra.mxu2 %v894_v54  ;;  %v477_v39 = vpop.f32.mrf.mxu3  ;;  %v582_v7 = vpop.f32.mrf.mxu0  ;;  %v910_v54 = vand.u32 4294901760, %v909_v22  ;;  %v924_v40 = vand.u32 4294901760, %v3180_v20 }
  0xc8   :  { %v478_v50 = vadd.f32 %v477_v39, %v391_v17  ;;  %v3153_v58 = vsub.f32 %v821_v43, %v3135_v26  ;;  %v2397_v17 = vld [vmem:[%s3967_s1 + $0xb0] sm:$0xff]  ;;  %781 = vperm.xlu1 %2463, %v2410_v15   ;;  %v2412_v15 = vld [vmem:[%s3968_s2 + $0xc0] sm:$0xff] }
  0xc9   :  { %v827_v38 = vsel %vm109_vm0, %v2397_v17, 0  ;;  %791 = vperm.xlu0 %2462, %v2412_v15  }
  0xca   :  { %v395_v8 = vpop.f32.mrf.mxu2  ;;  %v3129_v63 = vadd.f32 %v582_v7, %v478_v50  ;;  %v3131_v2 = vpop.f32.mrf.mxu1  ;;  %1093 = vmatmul.f32.gmra.mxu0 %v3033_v19  ;;  %v916_v55 = vand.u32 4294901760, %v3153_v58 }
  0xcb   :  { %v396_v5 = vadd.f32 %v395_v8, %v317_v25  ;;  %v3190_v25 = vand.u32 4294901760, %v827_v38 }
  0xcc   :  { %1016 = vmatmul.f32.gmra.mxu3 %v3045_v51  ;;  %v917_v11 = vsub.f32 %v3153_v58, %v916_v55 }
  0xcd   :  { %1183 = vmatmul.f32.gmra.mxu1 %v884_v23  ;;  %v3207_v22 = vsub.f32 %v827_v38, %v3190_v25 }
  0xce   :  { %771 = vperm.xlu2 %2464, %v2408_v61  }
  0xcf   :  { %903 = vmatmul.f32.gmra.mxu2 %v902_v52  ;;  %v483_v6 = vpop.f32.mrf.mxu3  ;;  %v586_v28 = vpop.f32.mrf.mxu0  ;;  %v918_v52 = vand.u32 4294901760, %v917_v11 }
  0xd0   :  { %v484_v62 = vadd.f32 %v483_v6, %v396_v5 }
  0xd2   :  { %v400_v19 = vpop.f32.mrf.mxu2  ;;  %v3157_v23 = vadd.f32 %v586_v28, %v484_v62  ;;  %v3159_v49 = vpop.f32.mrf.mxu1  ;;  %1098 = vmatmul.f32.gmra.mxu0 %v3066_v9  ;;  %v925_v28 = vsub.f32 %v3180_v20, %v924_v40 }
  0xd3   :  { %v401_v14 = vadd.f32 %v400_v19, %v321_v32 }
  0xd4   :  { %1020 = vmatmul.f32.gmra.mxu3 %v3079_v27  ;;  %v926_v19 = vand.u32 4294901760, %v925_v28 }
  0xd5   :  { %1189 = vmatmul.f32.gmra.mxu1 %v892_v48 }
  0xd7   :  { %911 = vmatmul.f32.gmra.mxu2 %v910_v54  ;;  %v489_v39 = vpop.f32.mrf.mxu3  ;;  %v590_v7 = vpop.f32.mrf.mxu0  ;;  %v3217_v54 = vand.u32 4294901760, %v830_v36 }
  0xd8   :  { %v490_v50 = vadd.f32 %v489_v39, %v401_v14  ;;  %v932_v14 = vand.u32 4294901760, %v3207_v22 }
  0xd9   :  { %v3234_v11 = vsub.f32 %v830_v36, %v3217_v54  ;;  %v836_v36 = vsel %vm109_vm0, %v2400_v33, 0 }
  0xda   :  { %v405_v9 = vpop.f32.mrf.mxu2  ;;  %v3184_v48 = vadd.f32 %v590_v7, %v490_v50  ;;  %v3186_v43 = vpop.f32.mrf.mxu1  ;;  %1103 = vmatmul.f32.gmra.mxu0 %v3097_v41  ;;  %v933_v7 = vsub.f32 %v3207_v22, %v932_v14 }
  0xdb   :  { %v406_v8 = vadd.f32 %v405_v9, %v325_v45 }
  0xdc   :  { %1024 = vmatmul.f32.gmra.mxu3 %v3108_v13  ;;  %v934_v9 = vand.u32 4294901760, %v933_v7 }
  0xdd   :  { %1195 = vmatmul.f32.gmra.mxu1 %v900_v16 }
  0xdf   :  { %919 = vmatmul.f32.gmra.mxu2 %v918_v52  ;;  %v495_v5 = vpop.f32.mrf.mxu3  ;;  %v594_v6 = vpop.f32.mrf.mxu0  ;;  %v3244_v52 = vand.u32 4294901760, %v833_v37 }
  0xe0   :  { %v496_v62 = vadd.f32 %v495_v5, %v406_v8  ;;  %v940_v8 = vand.u32 4294901760, %v3234_v11 }
  0xe1   :  { %v3259_v28 = vsub.f32 %v833_v37, %v3244_v52 }
  0xe2   :  { %v410_v41 = vpop.f32.mrf.mxu2  ;;  %v3211_v16 = vadd.f32 %v594_v6, %v496_v62  ;;  %v3213_v29 = vpop.f32.mrf.mxu1  ;;  %1108 = vmatmul.f32.gmra.mxu0 %v3124_v47  ;;  %v941_v6 = vsub.f32 %v3234_v11, %v940_v8 }
  0xe3   :  { %3987 = vst [vmem:[#allocation2_spill] sm:$0xff] %v3213_v29  ;;  %v411_v32 = vadd.f32 %v410_v41, %v329_v59 }
  0xe4   :  { %1028 = vmatmul.f32.gmra.mxu3 %v3135_v26  ;;  %v942_v41 = vand.u32 4294901760, %v941_v6 }
  0xe5   :  { %1201 = vmatmul.f32.gmra.mxu1 %v908_v4 }
  0xe7   :  { %927 = vmatmul.f32.gmra.mxu2 %v926_v19  ;;  %v501_v17 = vpop.f32.mrf.mxu3  ;;  %v598_v39 = vpop.f32.mrf.mxu0  ;;  %v3269_v19 = vand.u32 4294901760, %v836_v36 }
  0xe8   :  { %v502_v50 = vadd.f32 %v501_v17, %v411_v32  ;;  %v948_v32 = vand.u32 4294901760, %v3259_v28 }
  0xe9   :  { %v3279_v17 = vsub.f32 %v836_v36, %v3269_v19 }
  0xea   :  { %v415_v47 = vpop.f32.mrf.mxu2  ;;  %v3238_v4 = vadd.f32 %v598_v39, %v502_v50  ;;  %v3240_v38 = vpop.f32.mrf.mxu1  ;;  %1113 = vmatmul.f32.gmra.mxu0 %v3153_v58  ;;  %v949_v0 = vsub.f32 %v3259_v28, %v948_v32 }
  0xeb   :  { %3989 = vst [vmem:[#allocation4_spill] sm:$0xff] %v3240_v38  ;;  %v416_v45 = vadd.f32 %v415_v47, %v333_v24  ;;  %v2413_v47 = vld [vmem:[%s3968_s2 + $0xc8] sm:$0x3f] }
  0xec   :  { %3988 = vst [vmem:[#allocation3_spill] sm:$0xff] %v3238_v4  ;;  %1032 = vmatmul.f32.gmra.mxu3 %v3163_v31  ;;  %796 = vperm.xlu1 %2463, %v2413_v47  }
  0xed   :  { %1207 = vmatmul.f32.gmra.mxu1 %v916_v55 }
  0xef   :  { %935 = vmatmul.f32.gmra.mxu2 %v934_v9  ;;  %v507_v35 = vpop.f32.mrf.mxu3  ;;  %v602_v5 = vpop.f32.mrf.mxu0 }
  0xf0   :  { %v508_v62 = vadd.f32 %v507_v35, %v416_v45 }
  0xf2   :  { %v420_v44 = vpop.f32.mrf.mxu2  ;;  %v3263_v58 = vadd.f32 %v602_v5, %v508_v62  ;;  %v3265_v55 = vpop.f32.mrf.mxu1  ;;  %1118 = vmatmul.f32.gmra.mxu0 %v3180_v20  ;;  %v950_v20 = vand.u32 4294901760, %v949_v0  ;;  %v2411_v62 = vld [vmem:[%s3968_s2 + $0xb8] sm:$0xff] }
  0xf3   :  { %3991 = vst [vmem:[#allocation6_spill] sm:$0xff] %v3265_v55  ;;  %v421_v59 = vadd.f32 %v420_v44, %v337_v57  ;;  %786 = vperm.xlu2 %2464, %v2411_v62   ;;  %v2429_v62 = vld [vmem:[%s3968_s2 + $0xe0] sm:$0xff] }
  0xf4   :  { %3990 = vst [vmem:[#allocation5_spill] sm:$0xff] %v3263_v58  ;;  %1036 = vmatmul.f32.gmra.mxu3 %v3190_v25  ;;  %1435 = vperm.xlu1 %2463, %v2429_v62  }
  0xf5   :  { %1213 = vmatmul.f32.gmra.mxu1 %v924_v40  ;;  %v956_v40 = vand.u32 4294901760, %v3279_v17 }
  0xf7   :  { %943 = vmatmul.f32.gmra.mxu2 %v942_v41  ;;  %v513_v10 = vpop.f32.mrf.mxu3  ;;  %v606_v42 = vpop.f32.mrf.mxu0  ;;  %v957_v61 = vsub.f32 %v3279_v17, %v956_v40 }
  0xf8   :  { %v514_v39 = vadd.f32 %v513_v10, %v421_v59 }
  0xfa   :  { %v425_v7 = vpop.f32.mrf.mxu2  ;;  %v3281_v50 = vadd.f32 %v606_v42, %v514_v39  ;;  %v3283_v37 = vpop.f32.mrf.mxu1  ;;  %1123 = vmatmul.f32.gmra.mxu0 %v3207_v22 }
  0xfb   :  { %3993 = vst [vmem:[#allocation8_spill] sm:$0xff] %v3283_v37  ;;  %v426_v24 = vadd.f32 %v425_v7, %v2956_v3  ;;  %v2414_v3 = vld [vmem:[%s3967_s1 + $0xd0] sm:$0xff] }
  0xfc   :  { %3992 = vst [vmem:[#allocation7_spill] sm:$0xff] %v3281_v50  ;;  %1040 = vmatmul.f32.gmra.mxu3 %v3217_v54  ;;  %v1489_v6 = vsel %vm109_vm0, %v2414_v3, 0 }
  0xfd   :  { %1219 = vmatmul.f32.gmra.mxu1 %v932_v14  ;;  %v958_v14 = vand.u32 4294901760, %v957_v61  ;;  %v3309_v36 = vand.u32 4294901760, %v1489_v6 }
  0xff   :  { %951 = vmatmul.f32.gmra.mxu2 %v950_v20  ;;  %v519_v45 = vpop.f32.mrf.mxu3  ;;  %v610_v9 = vpop.f32.mrf.mxu0  ;;  %v3320_v10 = vsub.f32 %v1489_v6, %v3309_v36 }
 0x100   :  { %v520_v34 = vadd.f32 %v519_v45, %v426_v24 }
 0x101   :  { %v3974_v0 = vand.u32 4294901760, %v3320_v10 }
 0x102   :  { %v430_v33 = vpop.f32.mrf.mxu2  ;;  %v3298_v35 = vadd.f32 %v610_v9, %v520_v34  ;;  %v3300_v5 = vpop.f32.mrf.mxu1  ;;  %1128 = vmatmul.f32.gmra.mxu0 %v3234_v11 }
 0x103   :  { %3995 = vst [vmem:[#allocation10_spill] sm:$0xff] %v3300_v5  ;;  %v431_v22 = vadd.f32 %v430_v33, %v2983_v60  ;;  %v2415_v60 = vld [vmem:[%s3967_s1 + $0xd8] sm:$0xff]  ;;  %v1550_v9 = vsub.f32 %v3320_v10, %v3974_v0 }
 0x104   :  { %3994 = vst [vmem:[#allocation9_spill] sm:$0xff] %v3298_v35  ;;  %1044 = vmatmul.f32.gmra.mxu3 %v3244_v52  ;;  %v1492_v42 = vsel %vm109_vm0, %v2415_v60, 0 }
 0x105   :  { %1225 = vmatmul.f32.gmra.mxu1 %v940_v8  ;;  %v3326_v39 = vand.u32 4294901760, %v1492_v42  ;;  %v1551_v33 = vand.u32 4294901760, %v1550_v9 }
 0x107   :  { %959 = vmatmul.f32.gmra.mxu2 %v958_v14  ;;  %v525_v57 = vpop.f32.mrf.mxu3  ;;  %v614_v44 = vpop.f32.mrf.mxu0  ;;  %v3344_v61 = vsub.f32 %v1492_v42, %v3326_v39 }
 0x108   :  { %v526_v59 = vadd.f32 %v525_v57, %v431_v22 }
 0x109   :  { %v3973_v22 = vand.u32 4294901760, %v3344_v61 }
 0x10a   :  { %v435_v11 = vpop.f32.mrf.mxu2  ;;  %v3314_v41 = vadd.f32 %v614_v44, %v526_v59  ;;  %v3316_v15 = vpop.f32.mrf.mxu1  ;;  %1133 = vmatmul.f32.gmra.mxu0 %v3259_v28  ;;  %v2428_v28 = vld [vmem:[%s3968_s2 + $0xd8] sm:$0xff] }
 0x10b   :  { %3997 = vst [vmem:[#allocation12_spill] sm:$0xff] %v3316_v15  ;;  %v436_v8 = vadd.f32 %v435_v11, %v3006_v53  ;;  %v2416_v53 = vld [vmem:[%s3967_s1 + $0xe0] sm:$0xff]  ;;  %1430 = vperm.xlu0 %2462, %v2428_v28   ;;  %v1558_v59 = vsub.f32 %v3344_v61, %v3973_v22 }
 0x10c   :  { %3996 = vst [vmem:[#allocation11_spill] sm:$0xff] %v3314_v41  ;;  %1048 = vmatmul.f32.gmra.mxu3 %v3269_v19  ;;  %v1495_v3 = vsel %vm109_vm0, %v2416_v53, 0  ;;  %v2427_v53 = vld [vmem:[%s3968_s2 + $0xd0] sm:$0xff] }
 0x10d   :  { %1231 = vmatmul.f32.gmra.mxu1 %v948_v32  ;;  %v3350_v14 = vand.u32 4294901760, %v1495_v3  ;;  %v1559_v42 = vand.u32 4294901760, %v1558_v59  ;;  %1425 = vperm.xlu2 %2464, %v2427_v53  }
 0x10f   :  { %1270 = vmatmul.f32.vlgmr.msrb.gmra.mxu2 %v2940_v30  ;;  %v531_v7 = vpop.f32.mrf.mxu3  ;;  %v618_v24 = vpop.f32.mrf.mxu0  ;;  %v3367_v60 = vsub.f32 %v1495_v3, %v3350_v14 }
 0x110   :  { %v532_v20 = vadd.f32 %v531_v7, %v436_v8 }
 0x111   :  { %v3971_v7 = vand.u32 4294901760, %v3367_v60 }
 0x112   :  { %v440_v47 = vpop.f32.mrf.mxu2  ;;  %v3335_v32 = vadd.f32 %v618_v24, %v532_v20  ;;  %v3337_v45 = vpop.f32.mrf.mxu1  ;;  %1138 = vmatmul.f32.gmra.mxu0 %v3279_v17 }
 0x113   :  { %3999 = vst [vmem:[#allocation14_spill] sm:$0xff] %v3337_v45  ;;  %v441_v34 = vadd.f32 %v440_v47, %v3036_v12  ;;  %v2417_v12 = vld [vmem:[%s3967_s1 + $0xe8] sm:$0xff]  ;;  %v1566_v3 = vsub.f32 %v3367_v60, %v3971_v7 }
 0x114   :  { %3998 = vst [vmem:[#allocation13_spill] sm:$0xff] %v3335_v32  ;;  %1343 = vmatmul.f32.vlgmr.msrb.gmra.mxu3 %v2940_v30  ;;  %v1498_v8 = vsel %vm109_vm0, %v2417_v12, 0 }
 0x115   :  { %1237 = vmatmul.f32.gmra.mxu1 %v956_v40  ;;  %v3374_v24 = vand.u32 4294901760, %v1498_v8  ;;  %v1567_v62 = vand.u32 4294901760, %v1566_v3 }
 0x117   :  { %1274 = vmatmul.f32.gmra.mxu2 %v2966_v56  ;;  %v537_v17 = vpop.f32.mrf.mxu3  ;;  %v622_v6 = vpop.f32.mrf.mxu0 }
 0x118   :  { %v538_v57 = vadd.f32 %v537_v17, %v441_v34 }
 0x11a   :  { %v445_v30 = vpop.f32.mrf.mxu2  ;;  %v3359_v40 = vadd.f32 %v622_v6, %v538_v57  ;;  %v3361_v44 = vpop.f32.mrf.mxu1  ;;  %1552 = vmatmul.f32.vlgmr.msrb.gmra.mxu0 %v1551_v33  ;;  %v3391_v33 = vsub.f32 %v1498_v8, %v3374_v24 }
 0x11b   :  { %4001 = vst [vmem:[#allocation16_spill] sm:$0xff] %v3361_v44  ;;  %v446_v11 = vadd.f32 %v445_v30, %v3069_v1  ;;  %v737_v8 = vpop.permute.xlu1 %736 }
 0x11c   :  { %4000 = vst [vmem:[#allocation15_spill] sm:$0xff] %v3359_v40  ;;  %1347 = vmatmul.f32.gmra.mxu3 %v2966_v56  ;;  %v2418_v56 = vld [vmem:[%s3967_s1 + $0xf0] sm:$0xff]  ;;  %v3970_v57 = vand.u32 4294901760, %v3391_v33 }
 0x11d   :  { %1689 = vmatmul.f32.vlgmr.msrb.gmra.mxu1 %v3309_v36  ;;  %v1501_v6 = vsel %vm109_vm0, %v2418_v56, 0 }
 0x11e   :  { %v3398_v12 = vand.u32 4294901760, %v1501_v6  ;;  %v1574_v53 = vsub.f32 %v3391_v33, %v3970_v57 }
 0x11f   :  { %1278 = vmatmul.f32.gmra.mxu2 %v2990_v21  ;;  %v543_v28 = vpop.f32.mrf.mxu3  ;;  %v626_v20 = vpop.f32.mrf.mxu0 }
 0x120   :  { %v544_v1 = vadd.f32 %v543_v28, %v446_v11  ;;  %v2431_v11 = vld [vmem:[%s3968_s2 + $0xf0] sm:$0xff]  ;;  %v1575_v3 = vand.u32 4294901760, %v1574_v53 }
 0x121   :  { %1445 = vperm.xlu0 %2462, %v2431_v11  }
 0x122   :  { %v450_v47 = vpop.f32.mrf.mxu2  ;;  %v3383_v9 = vadd.f32 %v626_v20, %v544_v1  ;;  %v3385_v34 = vpop.f32.mrf.mxu1  ;;  %1560 = vmatmul.f32.gmra.mxu0 %v1559_v42  ;;  %v3415_v1 = vsub.f32 %v1501_v6, %v3398_v12  ;;  %v2432_v6 = vld [vmem:[%s3968_s2 + $0xf8] sm:$0xff] }
 0x123   :  { %4003 = vst [vmem:[#allocation18_spill] sm:$0xff] %v3385_v34  ;;  %v451_v17 = vadd.f32 %v450_v47, %v3101_v18  ;;  %1450 = vperm.xlu1 %2463, %v2432_v6  }
 0x124   :  { %4002 = vst [vmem:[#allocation17_spill] sm:$0xff] %v3383_v9  ;;  %1351 = vmatmul.f32.gmra.mxu3 %v2990_v21  ;;  %v2419_v21 = vld [vmem:[%s3967_s1 + $0xf8] sm:$0xff] }
 0x125   :  { %1693 = vmatmul.f32.gmra.mxu1 %v3326_v39  ;;  %v1504_v56 = vsel %vm109_vm0, %v2419_v21, 0 }
 0x127   :  { %1282 = vmatmul.f32.gmra.mxu2 %v3015_v46  ;;  %v549_v30 = vpop.f32.mrf.mxu3  ;;  %v630_v59 = vpop.f32.mrf.mxu0 }
 0x128   :  { %v550_v18 = vadd.f32 %v549_v30, %v451_v17  ;;  %v3972_v17 = vand.u32 4294901760, %v3415_v1  ;;  %v3421_v30 = vand.u32 4294901760, %v1504_v56 }
 0x12a   :  { %v3407_v42 = vadd.f32 %v630_v59, %v550_v18  ;;  %v864_v28 = vpop.f32.mrf.mxu2  ;;  %v3409_v20 = vpop.f32.mrf.mxu1  ;;  %1568 = vmatmul.f32.gmra.mxu0 %v1567_v62  ;;  %v1582_v53 = vsub.f32 %v3415_v1, %v3972_v17  ;;  %v3438_v57 = vsub.f32 %v1504_v56, %v3421_v30  ;;  %v2430_v56 = vld [vmem:[%s3968_s2 + $0xe8] sm:$0xff] }
 0x12b   :  { %4005 = vst [vmem:[#allocation20_spill] sm:$0xff] %v3409_v20  ;;  %v865_v47 = vadd.f32 %v864_v28, %v737_v8  ;;  %v742_v18 = vpop.permute.xlu2 %741  ;;  %1440 = vperm.xlu2 %2464, %v2430_v56  }
 0x12c   :  { %4004 = vst [vmem:[#allocation19_spill] sm:$0xff] %v3407_v42  ;;  %1355 = vmatmul.f32.gmra.mxu3 %v3015_v46  ;;  %v2420_v46 = vld [vmem:[%s3967_s1 + $0x100] sm:$0xff]  ;;  %v1583_v6 = vand.u32 4294901760, %v1582_v53 }
 0x12d   :  { %1697 = vmatmul.f32.gmra.mxu1 %v3350_v14 }
 0x12f   :  { %1286 = vmatmul.f32.gmra.mxu2 %v3045_v51  ;;  %v1001_v62 = vpop.f32.mrf.mxu3  ;;  %v1079_v59 = vpop.f32.mrf.mxu0 }
 0x130   :  { %v1002_v11 = vadd.f32 %v1001_v62, %v865_v47  ;;  %v1507_v47 = vsel %vm109_vm0, %v2420_v46, 0  ;;  %v747_v46 = vpop.permute.xlu0 %746 }
 0x132   :  { %v872_v21 = vpop.f32.mrf.mxu2  ;;  %v3430_v8 = vadd.f32 %v1079_v59, %v1002_v11  ;;  %v3432_v28 = vpop.f32.mrf.mxu1  ;;  %1576 = vmatmul.f32.gmra.mxu0 %v1575_v3  ;;  %v3975_v59 = vand.u32 4294901760, %v3438_v57  ;;  %v3444_v11 = vand.u32 4294901760, %v1507_v47 }
 0x133   :  { %v873_v62 = vadd.f32 %v872_v21, %v742_v18 }
 0x134   :  { %1359 = vmatmul.f32.gmra.mxu3 %v3045_v51  ;;  %v2421_v51 = vld [vmem:[%s3967_s1 + $0x108] sm:$0xff]  ;;  %v1590_v22 = vsub.f32 %v3438_v57, %v3975_v59  ;;  %v3461_v0 = vsub.f32 %v1507_v47, %v3444_v11 }
 0x135   :  { %1701 = vmatmul.f32.gmra.mxu1 %v3374_v24  ;;  %v2434_v47 = vld [vmem:[%s3968_s2 + $0x108] sm:$0xff] }
 0x136   :  { %v1591_v56 = vand.u32 4294901760, %v1590_v22  ;;  %1460 = vperm.xlu0 %2462, %v2434_v47  }
 0x137   :  { %1290 = vmatmul.f32.gmra.mxu2 %v3079_v27  ;;  %v1005_v3 = vpop.f32.mrf.mxu3  ;;  %v1084_v7 = vpop.f32.mrf.mxu0 }
 0x138   :  { %v1006_v17 = vadd.f32 %v1005_v3, %v873_v62  ;;  %v1510_v62 = vsel %vm109_vm0, %v2421_v51, 0  ;;  %v752_v51 = vpop.permute.xlu1 %751 }
 0x13a   :  { %v880_v18 = vpop.f32.mrf.mxu2  ;;  %v3453_v21 = vadd.f32 %v1084_v7, %v1006_v17  ;;  %v3455_v53 = vpop.f32.mrf.mxu1  ;;  %1584 = vmatmul.f32.gmra.mxu0 %v1583_v6  ;;  %v3976_v7 = vand.u32 4294901760, %v3461_v0  ;;  %v3467_v17 = vand.u32 4294901760, %v1510_v62 }
 0x13b   :  { %v881_v3 = vadd.f32 %v880_v18, %v747_v46 }
 0x13c   :  { %1363 = vmatmul.f32.gmra.mxu3 %v3079_v27  ;;  %v2422_v27 = vld [vmem:[%s3967_s1 + $0x110] sm:$0xff]  ;;  %v1598_v42 = vsub.f32 %v3461_v0, %v3976_v7  ;;  %v3484_v34 = vsub.f32 %v1510_v62, %v3467_v17 }
 0x13d   :  { %1705 = vmatmul.f32.gmra.mxu1 %v3398_v12  ;;  %v2435_v62 = vld [vmem:[%s3968_s2 + $0x110] sm:$0xff] }
 0x13e   :  { %v1599_v47 = vand.u32 4294901760, %v1598_v42  ;;  %1465 = vperm.xlu1 %2463, %v2435_v62  }
 0x13f   :  { %1294 = vmatmul.f32.gmra.mxu2 %v3108_v13  ;;  %v1009_v6 = vpop.f32.mrf.mxu3  ;;  %v1089_v20 = vpop.f32.mrf.mxu0 }
 0x140   :  { %v1010_v59 = vadd.f32 %v1009_v6, %v881_v3  ;;  %v1513_v3 = vsel %vm109_vm0, %v2422_v27, 0  ;;  %v757_v27 = vpop.permute.xlu2 %756 }
 0x142   :  { %v888_v22 = vpop.f32.mrf.mxu2  ;;  %v3476_v46 = vadd.f32 %v1089_v20, %v1010_v59  ;;  %v3478_v18 = vpop.f32.mrf.mxu1  ;;  %1592 = vmatmul.f32.gmra.mxu0 %v1591_v56  ;;  %v3977_v20 = vand.u32 4294901760, %v3484_v34  ;;  %v3490_v59 = vand.u32 4294901760, %v1513_v3 }
 0x143   :  { %v889_v6 = vadd.f32 %v888_v22, %v752_v51 }
 0x144   :  { %1367 = vmatmul.f32.gmra.mxu3 %v3108_v13  ;;  %v2423_v13 = vld [vmem:[%s3967_s1 + $0x118] sm:$0xff]  ;;  %v1606_v44 = vsub.f32 %v3484_v34, %v3977_v20  ;;  %v3507_v40 = vsub.f32 %v1513_v3, %v3490_v59  ;;  %v2433_v3 = vld [vmem:[%s3968_s2 + $0x100] sm:$0xff] }
 0x145   :  { %1709 = vmatmul.f32.gmra.mxu1 %v3421_v30  ;;  %1455 = vperm.xlu2 %2464, %v2433_v3  }
 0x146   :  { %v1607_v62 = vand.u32 4294901760, %v1606_v44 }
 0x147   :  { %1298 = vmatmul.f32.gmra.mxu2 %v3135_v26  ;;  %v1013_v56 = vpop.f32.mrf.mxu3  ;;  %v1094_v9 = vpop.f32.mrf.mxu0 }
 0x148   :  { %v1014_v7 = vadd.f32 %v1013_v56, %v889_v6  ;;  %v1516_v6 = vsel %vm109_vm0, %v2423_v13, 0  ;;  %v762_v13 = vpop.permute.xlu0 %761 }
 0x14a   :  { %v896_v42 = vpop.f32.mrf.mxu2  ;;  %v3499_v51 = vadd.f32 %v1094_v9, %v1014_v7  ;;  %v3501_v22 = vpop.f32.mrf.mxu1  ;;  %1600 = vmatmul.f32.gmra.mxu0 %v1599_v47  ;;  %v3978_v9 = vand.u32 4294901760, %v3507_v40  ;;  %v3513_v7 = vand.u32 4294901760, %v1516_v6 }
 0x14b   :  { %v897_v56 = vadd.f32 %v896_v42, %v757_v27 }
 0x14c   :  { %1371 = vmatmul.f32.gmra.mxu3 %v3135_v26  ;;  %4006 = vst [vmem:[#allocation21_spill] sm:$0xff] %v3513_v7  ;;  %v2424_v26 = vld [vmem:[%s3967_s1 + $0x120] sm:$0xff]  ;;  %v1614_v32 = vsub.f32 %v3507_v40, %v3978_v9  ;;  %v3530_v15 = vsub.f32 %v1516_v6, %v3513_v7 }
 0x14d   :  { %1713 = vmatmul.f32.gmra.mxu1 %v3444_v11  ;;  %v2437_v6 = vld [vmem:[%s3968_s2 + $0x120] sm:$0xff] }
 0x14e   :  { %v1615_v3 = vand.u32 4294901760, %v1614_v32  ;;  %1475 = vperm.xlu0 %2462, %v2437_v6  }
 0x14f   :  { %1302 = vmatmul.f32.gmra.mxu2 %v3163_v31  ;;  %v1017_v47 = vpop.f32.mrf.mxu3  ;;  %v1099_v45 = vpop.f32.mrf.mxu0 }
 0x150   :  { %v1018_v20 = vadd.f32 %v1017_v47, %v897_v56  ;;  %v1519_v56 = vsel %vm109_vm0, %v2424_v26, 0  ;;  %v767_v26 = vpop.permute.xlu1 %766 }
 0x152   :  { %v904_v44 = vpop.f32.mrf.mxu2  ;;  %v3522_v27 = vadd.f32 %v1099_v45, %v1018_v20  ;;  %v3524_v42 = vpop.f32.mrf.mxu1  ;;  %1608 = vmatmul.f32.gmra.mxu0 %v1607_v62  ;;  %v3979_v45 = vand.u32 4294901760, %v3530_v15  ;;  %v3536_v20 = vand.u32 4294901760, %v1519_v56 }
 0x153   :  { %v905_v47 = vadd.f32 %v904_v44, %v762_v13 }
 0x154   :  { %1375 = vmatmul.f32.gmra.mxu3 %v3163_v31  ;;  %v2425_v31 = vld [vmem:[%s3967_s1 + $0x128] sm:$0xff]  ;;  %v1622_v5 = vsub.f32 %v3530_v15, %v3979_v45  ;;  %v3553_v35 = vsub.f32 %v1519_v56, %v3536_v20 }
 0x155   :  { %1717 = vmatmul.f32.gmra.mxu1 %v3467_v17  ;;  %v2438_v56 = vld [vmem:[%s3968_s2 + $0x128] sm:$0xff] }
 0x156   :  { %v1623_v6 = vand.u32 4294901760, %v1622_v5  ;;  %1480 = vperm.xlu1 %2463, %v2438_v56  }
 0x157   :  { %1306 = vmatmul.f32.gmra.mxu2 %v3190_v25  ;;  %v1021_v62 = vpop.f32.mrf.mxu3  ;;  %v1104_v41 = vpop.f32.mrf.mxu0 }
 0x158   :  { %v1022_v9 = vadd.f32 %v1021_v62, %v905_v47  ;;  %v1522_v47 = vsel %vm109_vm0, %v2425_v31, 0  ;;  %v772_v31 = vpop.permute.xlu2 %771 }
 0x15a   :  { %v912_v32 = vpop.f32.mrf.mxu2  ;;  %v3545_v13 = vadd.f32 %v1104_v41, %v1022_v9  ;;  %v3547_v44 = vpop.f32.mrf.mxu1  ;;  %1616 = vmatmul.f32.gmra.mxu0 %v1615_v3  ;;  %v3980_v41 = vand.u32 4294901760, %v3553_v35  ;;  %v3559_v9 = vand.u32 4294901760, %v1522_v47 }
 0x15b   :  { %v913_v62 = vadd.f32 %v912_v32, %v767_v26 }
 0x15c   :  { %1379 = vmatmul.f32.gmra.mxu3 %v3190_v25  ;;  %v2426_v25 = vld [vmem:[%s3967_s1 + $0x130] sm:$0x3f]  ;;  %v1630_v50 = vsub.f32 %v3553_v35, %v3980_v41  ;;  %v3576_v55 = vsub.f32 %v1522_v47, %v3559_v9  ;;  %v2436_v47 = vld [vmem:[%s3968_s2 + $0x118] sm:$0xff] }
 0x15d   :  { %1721 = vmatmul.f32.gmra.mxu1 %v3490_v59  ;;  %1470 = vperm.xlu2 %2464, %v2436_v47   ;;  %v782_v47 = vpop.permute.xlu1 %781 }
 0x15e   :  { %v1631_v56 = vand.u32 4294901760, %v1630_v50 }
 0x15f   :  { %1310 = vmatmul.f32.gmra.mxu2 %v3217_v54  ;;  %v1025_v3 = vpop.f32.mrf.mxu3  ;;  %v1109_v37 = vpop.f32.mrf.mxu0 }
 0x160   :  { %v1026_v45 = vadd.f32 %v1025_v3, %v913_v62  ;;  %v1525_v62 = vsel %vm109_vm0, %v2426_v25, 0  ;;  %v777_v25 = vpop.permute.xlu0 %776 }
 0x162   :  { %v920_v5 = vpop.f32.mrf.mxu2  ;;  %v3568_v26 = vadd.f32 %v1109_v37, %v1026_v45  ;;  %v3570_v32 = vpop.f32.mrf.mxu1  ;;  %1624 = vmatmul.f32.gmra.mxu0 %v1623_v6  ;;  %v3983_v37 = vand.u32 4294901760, %v3576_v55  ;;  %v3582_v45 = vand.u32 4294901760, %v1525_v62 }
 0x163   :  { %v921_v3 = vadd.f32 %v920_v5, %v772_v31 }
 0x164   :  { %1383 = vmatmul.f32.gmra.mxu3 %v3217_v54  ;;  %4007 = vst [vmem:[#allocation22_spill] sm:$0xff] %v3582_v45  ;;  %v1638_v50 = vsub.f32 %v3576_v55, %v3983_v37  ;;  %v3596_v38 = vsub.f32 %v1525_v62, %v3582_v45 }
 0x165   :  { %1725 = vmatmul.f32.gmra.mxu1 %v3513_v7 }
 0x167   :  { %1314 = vmatmul.f32.gmra.mxu2 %v3244_v52  ;;  %v1029_v6 = vpop.f32.mrf.mxu3  ;;  %v1114_v58 = vpop.f32.mrf.mxu0 }
 0x168   :  { %v1030_v41 = vadd.f32 %v1029_v6, %v921_v3  ;;  %v1639_v3 = vand.u32 4294901760, %v1638_v50  ;;  %v3984_v6 = vand.u32 4294901760, %v3596_v38 }
 0x16a   :  { %v928_v54 = vpop.f32.mrf.mxu2  ;;  %v3588_v31 = vadd.f32 %v1114_v58, %v1030_v41  ;;  %v3590_v5 = vpop.f32.mrf.mxu1  ;;  %1632 = vmatmul.f32.gmra.mxu0 %v1631_v56 }
 0x16b   :  { %v929_v4 = vadd.f32 %v928_v54, %v777_v25 }
 0x16c   :  { %1387 = vmatmul.f32.gmra.mxu3 %v3244_v52  ;;  %v1646_v52 = vsub.f32 %v3596_v38, %v3984_v6  ;;  %v4008_v6 = vand.u32 4294901760, %v3320_v10 }
 0x16d   :  { %1729 = vmatmul.f32.gmra.mxu1 %v3536_v20 }
 0x16e   :  { %v1647_v25 = vand.u32 4294901760, %v1646_v52  ;;  %v2439_v52 = vld [vmem:[%s3968_s2 + $0x130] sm:$0x3f] }
 0x16f   :  { %1318 = vmatmul.f32.gmra.mxu2 %v3269_v19  ;;  %v1033_v58 = vpop.f32.mrf.mxu3  ;;  %v1119_v41 = vpop.f32.mrf.mxu0  ;;  %1485 = vperm.xlu2 %2464, %v2439_v52  }
 0x170   :  { %v1034_v56 = vadd.f32 %v1033_v58, %v929_v4  ;;  %v787_v58 = vpop.permute.xlu2 %786 }
 0x172   :  { %v936_v7 = vpop.f32.mrf.mxu2  ;;  %v3602_v29 = vadd.f32 %v1119_v41, %v1034_v56  ;;  %v3604_v37 = vpop.f32.mrf.mxu1  ;;  %1640 = vmatmul.f32.gmra.mxu0 %v1639_v3 }
 0x173   :  { %v937_v62 = vadd.f32 %v936_v7, %v782_v47 }
 0x174   :  { %1391 = vmatmul.f32.gmra.mxu3 %v3269_v19 }
 0x175   :  { %1733 = vmatmul.f32.gmra.mxu1 %v3559_v9 }
 0x177   :  { %1767 = vmatmul.f32.vlgmr.msra.gmra.mxu2 %v3320_v10  ;;  %v1037_v4 = vpop.f32.mrf.mxu3  ;;  %v1124_v54 = vpop.f32.mrf.mxu0  ;;  %v4009_v10 = vand.u32 4294901760, %v3344_v61 }
 0x178   :  { %v1038_v50 = vadd.f32 %v1037_v4, %v937_v62  ;;  %v792_v4 = vpop.permute.xlu0 %791 }
 0x17a   :  { %v944_v41 = vpop.f32.mrf.mxu2  ;;  %v3612_v56 = vadd.f32 %v1124_v54, %v1038_v50  ;;  %v3614_v3 = vpop.f32.mrf.mxu1  ;;  %1648 = vmatmul.f32.gmra.mxu0 %v1647_v25 }
 0x17b   :  { %v945_v19 = vadd.f32 %v944_v41, %v787_v58 }
 0x17c   :  { %1854 = vmatmul.f32.vlgmr.msra.gmra.mxu3 %v4008_v6 }
 0x17d   :  { %1737 = vmatmul.f32.gmra.mxu1 %v3582_v45 }
 0x17f   :  { %1772 = vmatmul.f32.gmra.mxu2 %v3344_v61  ;;  %v1041_v7 = vpop.f32.mrf.mxu3  ;;  %v1129_v47 = vpop.f32.mrf.mxu0 }
 0x180   :  { %v1042_v62 = vadd.f32 %v1041_v7, %v945_v19  ;;  %v797_v7 = vpop.permute.xlu1 %796 }
 0x182   :  { %v952_v54 = vpop.f32.mrf.mxu2  ;;  %v3623_v50 = vadd.f32 %v1129_v47, %v1042_v62  ;;  %v3625_v25 = vpop.f32.mrf.mxu1  ;;  %1959 = vmatmul.f32.vlgmr.msra.gmra.mxu0 %v3309_v36  ;;  %v4010_v62 = vand.u32 4294901760, %v3367_v60 }
 0x183   :  { %v953_v6 = vadd.f32 %v952_v54, %v792_v4 }
 0x184   :  { %1860 = vmatmul.f32.gmra.mxu3 %v4009_v10  ;;  %v1167_v10 = vadd.f32 %v3432_v28, %v3430_v8  ;;  %v1173_v8 = vadd.f32 %v3455_v53, %v3453_v21  ;;  %v1179_v21 = vadd.f32 %v3478_v18, %v3476_v46 }
 0x185   :  { %2032 = vmatmul.f32.vlgmr.msra.gmra.mxu1 %v3309_v36 }
 0x187   :  { %1777 = vmatmul.f32.gmra.mxu2 %v3367_v60  ;;  %v1045_v58 = vpop.f32.mrf.mxu3  ;;  %v1134_v41 = vpop.f32.mrf.mxu0 }
 0x188   :  { %v1046_v19 = vadd.f32 %v1045_v58, %v953_v6 }
 0x18a   :  { %v960_v52 = vpop.f32.mrf.mxu2  ;;  %v3632_v45 = vadd.f32 %v1134_v41, %v1046_v19  ;;  %v3634_v47 = vpop.f32.mrf.mxu1  ;;  %1963 = vmatmul.f32.gmra.mxu0 %v3326_v39  ;;  %v4011_v19 = vand.u32 4294901760, %v3391_v33 }
 0x18b   :  { %v961_v61 = vadd.f32 %v960_v52, %v797_v7 }
 0x18c   :  { %1866 = vmatmul.f32.gmra.mxu3 %v4010_v62 }
 0x18d   :  { %2036 = vmatmul.f32.gmra.mxu1 %v3326_v39 }
 0x18f   :  { %1782 = vmatmul.f32.gmra.mxu2 %v3391_v33  ;;  %v1049_v36 = vpop.f32.mrf.mxu3  ;;  %v1139_v4 = vpop.f32.mrf.mxu0  ;;  %v4012_v33 = vand.u32 4294901760, %v3415_v1 }
 0x190   :  { %v1050_v54 = vadd.f32 %v1049_v36, %v961_v61 }
 0x192   :  { %v3643_v6 = vadd.f32 %v1139_v4, %v1050_v54  ;;  %v1271_v58 = vpop.f32.mrf.mxu2  ;;  %v3645_v41 = vpop.f32.mrf.mxu1  ;;  %1967 = vmatmul.f32.gmra.mxu0 %v3350_v14 }
 0x193   :  { %v1272_v60 = vadd.f32 %v1271_v58, %v1167_v10 }
 0x194   :  { %1872 = vmatmul.f32.gmra.mxu3 %v4011_v19 }
 0x195   :  { %2040 = vmatmul.f32.gmra.mxu1 %v3350_v14 }
 0x197   :  { %1787 = vmatmul.f32.gmra.mxu2 %v3415_v1  ;;  %v1344_v39 = vpop.f32.mrf.mxu3  ;;  %v3652_v7 = vpop.f32.mrf.mxu0 }
 0x198   :  { %v1345_v52 = vadd.f32 %v1344_v39, %v1272_v60  ;;  %v3672_v39 = vpop.permute.xlu2 %1425 }
 0x19a   :  { %v2440_v28 = vmul.f32 -1.442695, %v1345_v52  ;;  %v1275_v62 = vpop.f32.mrf.mxu2  ;;  %v3656_v61 = vpop.f32.mrf.mxu1  ;;  %1971 = vmatmul.f32.gmra.mxu0 %v3374_v24 }
 0x19b   :  { %v1276_v36 = vadd.f32 %v1275_v62, %v1173_v8  ;;  %v1436_v52 = vpop.permute.xlu1 %1435  ;;  %v1185_v62 = vadd.f32 %v3501_v22, %v3499_v51  ;;  %v3686_v51 = vpop.permute.xlu0 %1430 }
 0x19c   :  { %2465 = vpow2.f32 %v2440_v28  ;;  %1878 = vmatmul.f32.gmra.mxu3 %v4012_v33 }
 0x19d   :  { %2044 = vmatmul.f32.gmra.mxu1 %v3374_v24  ;;  %v4013_v24 = vand.u32 4294901760, %v3438_v57 }
 0x19f   :  { %1792 = vmatmul.f32.gmra.mxu2 %v3438_v57  ;;  %v1348_v14 = vpop.f32.mrf.mxu3  ;;  %v3663_v4 = vpop.f32.mrf.mxu0 }
 0x1a0   :  { %v1349_v54 = vadd.f32 %v1348_v14, %v1276_v36  ;;  %v1441_v22 = vpop.permute.xlu2 %1440 }
 0x1a2   :  { %v2466_v53 = vpop.eup %2465  ;;  %v2441_v10 = vmul.f32 -1.442695, %v1349_v54  ;;  %v1279_v58 = vpop.f32.mrf.mxu2  ;;  %1975 = vmatmul.f32.gmra.mxu0 %v3398_v12 }
 0x1a3   :  { %v3667_v60 = vpop.f32.mrf.mxu1  ;;  %v2123_v1 = vadd.f32 1.0, %v2466_v53  ;;  %v1280_v19 = vadd.f32 %v1279_v58, %v1179_v21 }
 0x1a4   :  { %2467 = vpow2.f32 %v2441_v10  ;;  %1884 = vmatmul.f32.gmra.mxu3 %v4013_v24  ;;  %v4015_v10 = vand.u32 4294901760, %v3461_v0 }
 0x1a5   :  { %2469 = vrcp.f32 %v2123_v1  ;;  %2048 = vmatmul.f32.gmra.mxu1 %v3398_v12  ;;  %vm2141_vm2 = vweird.f32 %v2123_v1 }
 0x1a7   :  { %1797 = vmatmul.f32.gmra.mxu2 %v3461_v0  ;;  %v1352_v46 = vpop.f32.mrf.mxu3  ;;  %v1569_v18 = vpop.f32.mrf.mxu0  ;;  %v1191_v0 = vadd.f32 %v3524_v42, %v3522_v27  ;;  %v4016_v27 = vand.u32 4294901760, %v3484_v34 }
 0x1a8   :  { %v1353_v8 = vadd.f32 %v1352_v46, %v1280_v19  ;;  %v1570_v28 = vadd.f32 %v1569_v18, %v1436_v52  ;;  %v2145_v46 = vand.u32 2147483647, %v2123_v1  ;;  %v2147_v18 = vand.u32 2147483648, %v2123_v1  ;;  %v1446_v42 = vpop.permute.xlu0 %1445 }
 0x1aa   :  { %v2468_v36 = vpop.eup %2467  ;;  %v2442_v33 = vmul.f32 -1.442695, %v1353_v8  ;;  %v1283_v14 = vpop.f32.mrf.mxu2  ;;  %1979 = vmatmul.f32.gmra.mxu0 %v3421_v30  ;;  %vm2146_vm4 = vcmp.eq.f32.partialorder %v2145_v46, 8.507059e+37 }
 0x1ab   :  { %v1698_v57 = vpop.f32.mrf.mxu1  ;;  %v2470_v54 = vpop.eup %2469  ;;  %v3679_v21 = vadd.f32 1.0, %v2468_v36  ;;  %v1284_v12 = vadd.f32 %v1283_v14, %v1185_v62 }
 0x1ac   :  { %v3681_v53 = vadd.f32 %v1698_v57, %v1570_v28  ;;  %2471 = vpow2.f32 %v2442_v33  ;;  %1890 = vmatmul.f32.gmra.mxu3 %v4015_v10  ;;  %v2137_v58 = vmul.f32 %v2470_v54, %v2123_v1  ;;  %vm2142_vm1 = vweird.f32 %v2470_v54 }
 0x1ad   :  { %2473 = vrcp.f32 %v3679_v21  ;;  %2052 = vmatmul.f32.gmra.mxu1 %v3421_v30  ;;  %v656_v33 = vadd.f32 %v3131_v2, %v3129_v63  ;;  %vm2143_vm3 = vmor %vm2141_vm2, %vm2142_vm1  ;;  %vm2156_vm6 = vweird.f32 %v3679_v21 }
 0x1ae   :  { %4014 = vst [vmem:[#allocation23_spill] sm:$0xff] %v3681_v53  ;;  %v2138_v19 = vsub.f32 1.0, %v2137_v58 }
 0x1af   :  { %1802 = vmatmul.f32.gmra.mxu2 %v3484_v34  ;;  %v1356_v24 = vpop.f32.mrf.mxu3  ;;  %v1577_v52 = vpop.f32.mrf.mxu0  ;;  %v2160_v34 = vand.u32 2147483647, %v3679_v21 }
 0x1b0   :  { %v1357_v8 = vadd.f32 %v1356_v24, %v1284_v12  ;;  %v1578_v28 = vadd.f32 %v1577_v52, %v1441_v22  ;;  %v2139_v62 = vmul.f32 %v2470_v54, %v2138_v19  ;;  %v2148_v19 = vor.u32 1.1754944e-38, %v2147_v18 }
 0x1b1   :  { %vm2161_vm8 = vcmp.eq.f32.partialorder %v2160_v34, 8.507059e+37 }
 0x1b2   :  { %v2472_v36 = vpop.eup %2471  ;;  %v2443_v30 = vmul.f32 -1.442695, %v1357_v8  ;;  %v1287_v14 = vpop.f32.mrf.mxu2  ;;  %1983 = vmatmul.f32.gmra.mxu0 %v3444_v11  ;;  %v2140_v10 = vadd.f32 %v2470_v54, %v2139_v62 }
 0x1b3   :  { %v1702_v57 = vpop.f32.mrf.mxu1  ;;  %v2474_v58 = vpop.eup %2473  ;;  %v3695_v53 = vadd.f32 1.0, %v2472_v36  ;;  %v1288_v12 = vadd.f32 %v1287_v14, %v1191_v0  ;;  %v660_v36 = vadd.f32 %v3159_v49, %v3157_v23  ;;  %v4017_v23 = vand.u32 4294901760, %v3507_v40 }
 0x1b4   :  { %v3697_v22 = vadd.f32 %v1702_v57, %v1578_v28  ;;  %2475 = vpow2.f32 %v2443_v30  ;;  %1896 = vmatmul.f32.gmra.mxu3 %v4016_v27  ;;  %v2144_v63 = vsel %vm2143_vm3, %v2470_v54, %v2140_v10  ;;  %v2152_v2 = vmul.f32 %v2474_v58, %v3679_v21 }
 0x1b5   :  { %2477 = vrcp.f32 %v3695_v53  ;;  %2056 = vmatmul.f32.gmra.mxu1 %v3444_v11  ;;  %v2149_v1 = vsel %vm2146_vm4, %v2148_v19, %v2144_v63  ;;  %v2162_v54 = vand.u32 2147483648, %v3679_v21  ;;  %vm2157_vm5 = vweird.f32 %v2474_v58  ;;  %v1451_v21 = vpop.permute.xlu1 %1450 }
 0x1b6   :  { %v3704_v24 = vmul.f32 %v2149_v1, %v656_v33  ;;  %v2153_v52 = vsub.f32 1.0, %v2152_v2  ;;  %v1197_v11 = vadd.f32 %v3547_v44, %v3545_v13  ;;  %vm2158_vm7 = vmor %vm2156_vm6, %vm2157_vm5  ;;  %vm2171_vm10 = vweird.f32 %v3695_v53 }
 0x1b7   :  { %1807 = vmatmul.f32.gmra.mxu2 %v3507_v40  ;;  %v1360_v18 = vpop.f32.mrf.mxu3  ;;  %v1585_v8 = vpop.f32.mrf.mxu0  ;;  %v2163_v13 = vor.u32 1.1754944e-38, %v2162_v54  ;;  %v2177_v40 = vand.u32 2147483648, %v3695_v53 }
 0x1b8   :  { %v1361_v46 = vadd.f32 %v1360_v18, %v1288_v12  ;;  %v1586_v28 = vadd.f32 %v1585_v8, %v1446_v42  ;;  %v2154_v62 = vmul.f32 %v2474_v58, %v2153_v52  ;;  %v2175_v18 = vand.u32 2147483647, %v3695_v53 }
 0x1ba   :  { %v2476_v0 = vpop.eup %2475  ;;  %v2444_v33 = vmul.f32 -1.442695, %v1361_v46  ;;  %v1291_v30 = vpop.f32.mrf.mxu2  ;;  %1987 = vmatmul.f32.gmra.mxu0 %v3467_v17  ;;  %v2155_v57 = vadd.f32 %v2474_v58, %v2154_v62  ;;  %v664_v46 = vadd.f32 %v3186_v43, %v3184_v48  ;;  %v4018_v48 = vand.u32 4294901760, %v3530_v15 }
 0x1bb   :  { %v1706_v14 = vpop.f32.mrf.mxu1  ;;  %v2478_v10 = vpop.eup %2477  ;;  %v3715_v12 = vadd.f32 1.0, %v2476_v0  ;;  %v1292_v19 = vadd.f32 %v1291_v30, %v1197_v11  ;;  %vm2176_vm12 = vcmp.eq.f32.partialorder %v2175_v18, 8.507059e+37 }
 0x1bc   :  { %v3717_v27 = vadd.f32 %v1706_v14, %v1586_v28  ;;  %v2167_v44 = vmul.f32 %v2478_v10, %v3695_v53  ;;  %2479 = vpow2.f32 %v2444_v33  ;;  %1902 = vmatmul.f32.gmra.mxu3 %v4017_v23  ;;  %v2159_v49 = vsel %vm2158_vm7, %v2474_v58, %v2155_v57  ;;  %v1456_v53 = vpop.permute.xlu2 %1455 }
 0x1bd   :  { %2481 = vrcp.f32 %v3715_v12  ;;  %2060 = vmatmul.f32.gmra.mxu1 %v3467_v17  ;;  %v2164_v63 = vsel %vm2161_vm8, %v2163_v13, %v2159_v49  ;;  %vm2172_vm9 = vweird.f32 %v2478_v10  ;;  %v1203_v17 = vadd.f32 %v3570_v32, %v3568_v26 }
 0x1be   :  { %v3724_v2 = vmul.f32 %v2164_v63, %v660_v36  ;;  %v2168_v42 = vsub.f32 1.0, %v2167_v44  ;;  %vm2173_vm11 = vmor %vm2171_vm10, %vm2172_vm9  ;;  %v2178_v26 = vor.u32 1.1754944e-38, %v2177_v40  ;;  %v2190_v49 = vand.u32 2147483647, %v3715_v12 }
 0x1bf   :  { %1812 = vmatmul.f32.gmra.mxu2 %v3530_v15  ;;  %v1364_v1 = vpop.f32.mrf.mxu3  ;;  %v1593_v52 = vpop.f32.mrf.mxu0  ;;  %v2192_v15 = vand.u32 2147483648, %v3715_v12  ;;  %vm2186_vm14 = vweird.f32 %v3715_v12 }
 0x1c0   :  { %v1365_v8 = vadd.f32 %v1364_v1, %v1292_v19  ;;  %v1594_v58 = vadd.f32 %v1593_v52, %v1451_v21  ;;  %v2169_v34 = vmul.f32 %v2478_v10, %v2168_v42  ;;  %v4019_v1 = vld [vmem:[#allocation2_spill] sm:$0xff]  ;;  %vm2191_vm1 = vcmp.eq.f32.partialorder %v2190_v49, 8.507059e+37 }
 0x1c1   :  { %v668_v52 = vadd.f32 %v4019_v1, %v3211_v16  ;;  %v4021_v16 = vand.u32 4294901760, %v3553_v35 }
 0x1c2   :  { %v2480_v54 = vpop.eup %2479  ;;  %v2445_v28 = vmul.f32 -1.442695, %v1365_v8  ;;  %v1295_v62 = vpop.f32.mrf.mxu2  ;;  %1991 = vmatmul.f32.gmra.mxu0 %v3490_v59  ;;  %v2170_v0 = vadd.f32 %v2478_v10, %v2169_v34 }
 0x1c3   :  { %v1710_v11 = vpop.f32.mrf.mxu1  ;;  %v2482_v36 = vpop.eup %2481  ;;  %v3735_v33 = vadd.f32 1.0, %v2480_v54  ;;  %v1296_v30 = vadd.f32 %v1295_v62, %v1203_v17 }
 0x1c4   :  { %v3737_v14 = vadd.f32 %v1710_v11, %v1594_v58  ;;  %v2182_v32 = vmul.f32 %v2482_v36, %v3715_v12  ;;  %2483 = vpow2.f32 %v2445_v28  ;;  %1908 = vmatmul.f32.gmra.mxu3 %v4018_v48  ;;  %v2174_v43 = vsel %vm2173_vm11, %v2478_v10, %v2170_v0  ;;  %v4020_v58 = vld [vmem:[#allocation21_spill] sm:$0xff]  ;;  %v1461_v12 = vpop.permute.xlu0 %1460 }
 0x1c5   :  { %2485 = vrcp.f32 %v3735_v33  ;;  %2064 = vmatmul.f32.gmra.mxu1 %v3490_v59  ;;  %v2179_v57 = vsel %vm2176_vm12, %v2178_v26, %v2174_v43  ;;  %vm2187_vm13 = vweird.f32 %v2482_v36  ;;  %v1209_v59 = vadd.f32 %v3590_v5, %v3588_v31 }
 0x1c6   :  { %v3744_v19 = vmul.f32 %v2179_v57, %v664_v46  ;;  %v2183_v13 = vsub.f32 1.0, %v2182_v32  ;;  %vm2188_vm15 = vmor %vm2186_vm14, %vm2187_vm13  ;;  %v2193_v31 = vor.u32 1.1754944e-38, %v2192_v15  ;;  %v2205_v48 = vand.u32 2147483647, %v3735_v33 }
 0x1c7   :  { %1817 = vmatmul.f32.gmra.mxu2 %v3553_v35  ;;  %v1368_v44 = vpop.f32.mrf.mxu3  ;;  %v1601_v23 = vpop.f32.mrf.mxu0  ;;  %v2207_v35 = vand.u32 2147483648, %v3735_v33  ;;  %v1215_v57 = vadd.f32 %v3604_v37, %v3602_v29  ;;  %vm2201_vm3 = vweird.f32 %v3735_v33 }
 0x1c8   :  { %v1369_v21 = vadd.f32 %v1368_v44, %v1296_v30  ;;  %v1602_v10 = vadd.f32 %v1601_v23, %v1456_v53  ;;  %v2184_v63 = vmul.f32 %v2482_v36, %v2183_v13  ;;  %v4022_v44 = vld [vmem:[#allocation3_spill] sm:$0xff]  ;;  %v4023_v23 = vld [vmem:[#allocation4_spill] sm:$0xff]  ;;  %vm2206_vm5 = vcmp.eq.f32.partialorder %v2205_v48, 8.507059e+37 }
 0x1c9   :  { %v672_v49 = vadd.f32 %v4023_v23, %v4022_v44  ;;  %v2208_v29 = vor.u32 1.1754944e-38, %v2207_v35  ;;  %v4027_v44 = vand.u32 4294901760, %v3596_v38 }
 0x1ca   :  { %v2484_v42 = vpop.eup %2483  ;;  %v2446_v18 = vmul.f32 -1.442695, %v1369_v21  ;;  %v1299_v40 = vpop.f32.mrf.mxu2  ;;  %1995 = vmatmul.f32.gmra.mxu0 %v4020_v58  ;;  %v2185_v34 = vadd.f32 %v2482_v36, %v2184_v63 }
 0x1cb   :  { %v1714_v8 = vpop.f32.mrf.mxu1  ;;  %v2486_v17 = vpop.eup %2485  ;;  %v3755_v54 = vadd.f32 1.0, %v2484_v42  ;;  %v1300_v46 = vadd.f32 %v1299_v40, %v1209_v59 }
 0x1cc   :  { %v3757_v28 = vadd.f32 %v1714_v8, %v1602_v10  ;;  %v2197_v5 = vmul.f32 %v2486_v17, %v3735_v33  ;;  %2487 = vpow2.f32 %v2446_v18  ;;  %1914 = vmatmul.f32.gmra.mxu3 %v4021_v16  ;;  %v2189_v62 = vsel %vm2188_vm15, %v2482_v36, %v2185_v34  ;;  %v1466_v33 = vpop.permute.xlu1 %1465 }
 0x1cd   :  { %2489 = vrcp.f32 %v3755_v54  ;;  %2068 = vmatmul.f32.gmra.mxu1 %v4020_v58  ;;  %v2194_v11 = vsel %vm2191_vm1, %v2193_v31, %v2189_v62  ;;  %vm2202_vm2 = vweird.f32 %v2486_v17  ;;  %v4024_v18 = vand.u32 4294901760, %v3576_v55 }
 0x1ce   :  { %v3764_v0 = vmul.f32 %v2194_v11, %v668_v52  ;;  %v2198_v30 = vsub.f32 1.0, %v2197_v5  ;;  %vm2203_vm4 = vmor %vm2201_vm3, %vm2202_vm2  ;;  %v2220_v5 = vand.u32 2147483647, %v3755_v54  ;;  %v4025_v11 = vld [vmem:[#allocation5_spill] sm:$0xff]  ;;  %vm2216_vm7 = vweird.f32 %v3755_v54 }
 0x1cf   :  { %1822 = vmatmul.f32.gmra.mxu2 %v3576_v55  ;;  %v1372_v26 = vpop.f32.mrf.mxu3  ;;  %v1609_v32 = vpop.f32.mrf.mxu0  ;;  %v2222_v55 = vand.u32 2147483648, %v3755_v54 }
 0x1d0   :  { %v1373_v43 = vadd.f32 %v1372_v26, %v1300_v46  ;;  %v1610_v36 = vadd.f32 %v1609_v32, %v1461_v12  ;;  %v2199_v53 = vmul.f32 %v2486_v17, %v2198_v30  ;;  %v4026_v30 = vld [vmem:[#allocation6_spill] sm:$0xff]  ;;  %vm2221_vm9 = vcmp.eq.f32.partialorder %v2220_v5, 8.507059e+37 }
 0x1d1   :  { %v676_v26 = vadd.f32 %v4026_v30, %v4025_v11  ;;  %v4030_v5 = vld [vmem:[#allocation22_spill] sm:$0xff]  ;;  %v1476_v11 = vpop.permute.xlu0 %1475 }
 0x1d2   :  { %v2488_v13 = vpop.eup %2487  ;;  %v2447_v15 = vmul.f32 -1.442695, %v1373_v43  ;;  %v1303_v21 = vpop.f32.mrf.mxu2  ;;  %1999 = vmatmul.f32.gmra.mxu0 %v3536_v20  ;;  %v2200_v63 = vadd.f32 %v2486_v17, %v2199_v53 }
 0x1d3   :  { %v1718_v10 = vpop.f32.mrf.mxu1  ;;  %v2490_v59 = vpop.eup %2489  ;;  %v3775_v42 = vadd.f32 1.0, %v2488_v13  ;;  %v1304_v1 = vadd.f32 %v1303_v21, %v1215_v57 }
 0x1d4   :  { %v3777_v52 = vadd.f32 %v1718_v10, %v1610_v36  ;;  %v2212_v37 = vmul.f32 %v2490_v59, %v3755_v54  ;;  %2491 = vpow2.f32 %v2447_v15  ;;  %1920 = vmatmul.f32.gmra.mxu3 %v4024_v18  ;;  %v2204_v40 = vsel %vm2203_vm4, %v2486_v17, %v2200_v63  ;;  %v1471_v54 = vpop.permute.xlu2 %1470 }
 0x1d5   :  { %2493 = vrcp.f32 %v3775_v42  ;;  %2072 = vmatmul.f32.gmra.mxu1 %v3536_v20  ;;  %v2209_v8 = vsel %vm2206_vm5, %v2208_v29, %v2204_v40  ;;  %vm2217_vm6 = vweird.f32 %v2490_v59  ;;  %v1221_v20 = vadd.f32 %v3614_v3, %v3612_v56 }
 0x1d6   :  { %v3784_v58 = vmul.f32 %v2209_v8, %v672_v49  ;;  %v2213_v34 = vsub.f32 1.0, %v2212_v37  ;;  %vm2218_vm8 = vmor %vm2216_vm7, %vm2217_vm6  ;;  %v2223_v56 = vor.u32 1.1754944e-38, %v2222_v55  ;;  %v2237_v29 = vand.u32 2147483648, %v3775_v42 }
 0x1d7   :  { %1827 = vmatmul.f32.gmra.mxu2 %v3596_v38  ;;  %v1376_v46 = vpop.f32.mrf.mxu3  ;;  %v1617_v31 = vpop.f32.mrf.mxu0  ;;  %vm2231_vm11 = vweird.f32 %v3775_v42 }
 0x1d8   :  { %v1377_v16 = vadd.f32 %v1376_v46, %v1304_v1  ;;  %v1618_v17 = vadd.f32 %v1617_v31, %v1466_v33  ;;  %v2214_v62 = vmul.f32 %v2490_v59, %v2213_v34  ;;  %v2235_v1 = vand.u32 2147483647, %v3775_v42  ;;  %v4029_v33 = vld [vmem:[#allocation8_spill] sm:$0xff] }
 0x1da   :  { %v2492_v12 = vpop.eup %2491  ;;  %v2448_v32 = vmul.f32 -1.442695, %v1377_v16  ;;  %v1307_v48 = vpop.f32.mrf.mxu2  ;;  %2003 = vmatmul.f32.gmra.mxu0 %v3559_v9  ;;  %v2215_v43 = vadd.f32 %v2490_v59, %v2214_v62  ;;  %vm2236_vm13 = vcmp.eq.f32.partialorder %v2235_v1, 8.507059e+37 }
 0x1db   :  { %v1722_v35 = vpop.f32.mrf.mxu1  ;;  %v2494_v36 = vpop.eup %2493  ;;  %v3795_v53 = vadd.f32 1.0, %v2492_v12  ;;  %v1308_v57 = vadd.f32 %v1307_v48, %v1221_v20 }
 0x1dc   :  { %v3797_v13 = vadd.f32 %v1722_v35, %v1618_v17  ;;  %v2227_v3 = vmul.f32 %v2494_v36, %v3775_v42  ;;  %2495 = vpow2.f32 %v2448_v32  ;;  %1926 = vmatmul.f32.gmra.mxu3 %v4027_v44  ;;  %v2219_v23 = vsel %vm2218_vm8, %v2490_v59, %v2215_v43 }
 0x1dd   :  { %2497 = vrcp.f32 %v3795_v53  ;;  %2076 = vmatmul.f32.gmra.mxu1 %v3559_v9  ;;  %v2224_v49 = vsel %vm2221_vm9, %v2223_v56, %v2219_v23  ;;  %vm2232_vm10 = vweird.f32 %v2494_v36  ;;  %v1227_v59 = vadd.f32 %v3625_v25, %v3623_v50  ;;  %v4028_v9 = vld [vmem:[#allocation7_spill] sm:$0xff]  ;;  %v4031_v23 = vld [vmem:[#allocation9_spill] sm:$0xff] }
 0x1de   :  { %v3804_v15 = vmul.f32 %v2224_v49, %v676_v26  ;;  %v2228_v21 = vsub.f32 1.0, %v2227_v3  ;;  %v680_v8 = vadd.f32 %v4029_v33, %v4028_v9  ;;  %vm2233_vm12 = vmor %vm2231_vm11, %vm2232_vm10  ;;  %v2238_v50 = vor.u32 1.1754944e-38, %v2237_v29 }
 0x1df   :  { %v1380_v10 = vpop.f32.mrf.mxu3  ;;  %v1625_v63 = vpop.f32.mrf.mxu0  ;;  %v2250_v35 = vand.u32 2147483647, %v3795_v53  ;;  %v2252_v43 = vand.u32 2147483648, %v3795_v53  ;;  %vm2246_vm15 = vweird.f32 %v3795_v53 }
 0x1e0   :  { %v1381_v37 = vadd.f32 %v1380_v10, %v1308_v57  ;;  %v1626_v38 = vadd.f32 %v1625_v63, %v1471_v54  ;;  %v2229_v18 = vmul.f32 %v2494_v36, %v2228_v21  ;;  %v4032_v54 = vld [vmem:[#allocation10_spill] sm:$0xff] }
 0x1e1   :  { %v684_v49 = vadd.f32 %v4032_v54, %v4031_v23  ;;  %vm2251_vm2 = vcmp.eq.f32.partialorder %v2250_v35, 8.507059e+37  ;;  %v1554_v54 = vadd.f32 %v3652_v7, %v3672_v39 }
 0x1e2   :  { %v2496_v40 = vpop.eup %2495  ;;  %v2449_v34 = vmul.f32 -1.442695, %v1381_v37  ;;  %v1311_v46 = vpop.f32.mrf.mxu2  ;;  %2007 = vmatmul.f32.gmra.mxu0 %v4030_v5  ;;  %v2230_v55 = vadd.f32 %v2494_v36, %v2229_v18 }
 0x1e3   :  { %v1726_v31 = vpop.f32.mrf.mxu1  ;;  %v2498_v16 = vpop.eup %2497  ;;  %v3814_v17 = vadd.f32 1.0, %v2496_v40  ;;  %v1312_v62 = vadd.f32 %v1311_v46, %v1227_v59  ;;  %v2253_v59 = vor.u32 1.1754944e-38, %v2252_v43  ;;  %v1691_v39 = vadd.f32 %v3656_v61, %v1554_v54 }
 0x1e4   :  { %v3816_v20 = vadd.f32 %v1726_v31, %v1626_v38  ;;  %v2242_v25 = vmul.f32 %v2498_v16, %v3795_v53  ;;  %2499 = vpow2.f32 %v2449_v34  ;;  %v2234_v12 = vsel %vm2233_vm12, %v2494_v36, %v2230_v55  ;;  %v1481_v40 = vpop.permute.xlu1 %1480 }
 0x1e5   :  { %2501 = vrcp.f32 %v3814_v17  ;;  %2080 = vmatmul.f32.gmra.mxu1 %v4030_v5  ;;  %v2239_v30 = vsel %vm2236_vm13, %v2238_v50, %v2234_v12  ;;  %vm2247_vm14 = vweird.f32 %v2498_v16  ;;  %v1233_v36 = vadd.f32 %v3634_v47, %v3632_v45  ;;  %v4034_v12 = vld [vmem:[#allocation12_spill] sm:$0xff] }
 0x1e6   :  { %v3821_v42 = vmul.f32 %v2239_v30, %v680_v8  ;;  %v2243_v26 = vsub.f32 1.0, %v2242_v25  ;;  %vm2248_vm1 = vmor %vm2246_vm15, %vm2247_vm14  ;;  %v2265_v46 = vand.u32 2147483647, %v3814_v17  ;;  %v2267_v31 = vand.u32 2147483648, %v3814_v17  ;;  %v4033_v25 = vld [vmem:[#allocation11_spill] sm:$0xff] }
 0x1e7   :  { %v1384_v32 = vpop.f32.mrf.mxu3  ;;  %v1633_v48 = vpop.f32.mrf.mxu0  ;;  %vm2261_vm4 = vweird.f32 %v3814_v17  ;;  %v1562_v61 = vadd.f32 %v3663_v4, %v3686_v51 }
 0x1e8   :  { %v1385_v57 = vadd.f32 %v1384_v32, %v1312_v62  ;;  %v1634_v56 = vadd.f32 %v1633_v48, %v1476_v11  ;;  %v2244_v3 = vmul.f32 %v2498_v16, %v2243_v26  ;;  %v688_v11 = vadd.f32 %v4034_v12, %v4033_v25 }
 0x1e9   :  { %vm2266_vm6 = vcmp.eq.f32.partialorder %v2265_v46, 8.507059e+37  ;;  %v1695_v51 = vadd.f32 %v3667_v60, %v1562_v61 }
 0x1ea   :  { %v2500_v44 = vpop.eup %2499  ;;  %v2450_v21 = vmul.f32 -1.442695, %v1385_v57  ;;  %v1315_v10 = vpop.f32.mrf.mxu2  ;;  %v2245_v1 = vadd.f32 %v2498_v16, %v2244_v3  ;;  %v2268_v3 = vor.u32 1.1754944e-38, %v2267_v31 }
 0x1eb   :  { %v1730_v63 = vpop.f32.mrf.mxu1  ;;  %v2502_v29 = vpop.eup %2501  ;;  %v3830_v37 = vadd.f32 1.0, %v2500_v44  ;;  %v1316_v38 = vadd.f32 %v1315_v10, %v1233_v36 }
 0x1ec   :  { %v3832_v18 = vadd.f32 %v1730_v63, %v1634_v56  ;;  %v2257_v45 = vmul.f32 %v2502_v29, %v3814_v17  ;;  %2503 = vpow2.f32 %v2450_v21  ;;  %v2249_v47 = vsel %vm2248_vm1, %v2498_v16, %v2245_v1  ;;  %v1486_v36 = vpop.permute.xlu2 %1485 }
 0x1ed   :  { %2505 = vrcp.f32 %v3830_v37  ;;  %v2254_v9 = vsel %vm2251_vm2, %v2253_v59, %v2249_v47  ;;  %vm2262_vm3 = vweird.f32 %v2502_v29  ;;  %v1239_v16 = vadd.f32 %v3645_v41, %v3643_v6  ;;  %v4036_v47 = vld [vmem:[#allocation14_spill] sm:$0xff] }
 0x1ee   :  { %v3836_v33 = vmul.f32 %v2254_v9, %v684_v49  ;;  %v2258_v53 = vsub.f32 1.0, %v2257_v45  ;;  %vm2263_vm5 = vmor %vm2261_vm4, %vm2262_vm3  ;;  %v2280_v10 = vand.u32 2147483647, %v3830_v37  ;;  %v2282_v63 = vand.u32 2147483648, %v3830_v37  ;;  %v4035_v45 = vld [vmem:[#allocation13_spill] sm:$0xff] }
 0x1ef   :  { %v1388_v8 = vpop.f32.mrf.mxu3  ;;  %v1641_v34 = vpop.f32.mrf.mxu0  ;;  %vm2276_vm8 = vweird.f32 %v3830_v37 }
 0x1f0   :  { %v1389_v5 = vadd.f32 %v1388_v8, %v1316_v38  ;;  %v1642_v55 = vadd.f32 %v1641_v34, %v1481_v40  ;;  %v2259_v62 = vmul.f32 %v2502_v29, %v2258_v53  ;;  %v692_v40 = vadd.f32 %v4036_v47, %v4035_v45 }
 0x1f1   :  { %vm2281_vm10 = vcmp.eq.f32.partialorder %v2280_v10, 8.507059e+37 }
 0x1f2   :  { %v2504_v50 = vpop.eup %2503  ;;  %v2451_v30 = vmul.f32 -1.442695, %v1389_v5  ;;  %v1319_v26 = vpop.f32.mrf.mxu2  ;;  %v2260_v48 = vadd.f32 %v2502_v29, %v2259_v62  ;;  %v2283_v5 = vor.u32 1.1754944e-38, %v2282_v63 }
 0x1f3   :  { %v1734_v32 = vpop.f32.mrf.mxu1  ;;  %v2506_v35 = vpop.eup %2505  ;;  %v3845_v43 = vadd.f32 1.0, %v2504_v50  ;;  %v1320_v57 = vadd.f32 %v1319_v26, %v1239_v16 }
 0x1f4   :  { %v3847_v56 = vadd.f32 %v1734_v32, %v1642_v55  ;;  %v2272_v6 = vmul.f32 %v2506_v35, %v3830_v37  ;;  %2507 = vpow2.f32 %v2451_v30  ;;  %v2264_v41 = vsel %vm2263_vm5, %v2502_v29, %v2260_v48 }
 0x1f5   :  { %2509 = vrcp.f32 %v3845_v43  ;;  %v2269_v44 = vsel %vm2266_vm6, %v2268_v3, %v2264_v41  ;;  %vm2277_vm7 = vweird.f32 %v2506_v35  ;;  %v2297_v30 = vand.u32 2147483648, %v3845_v43 }
 0x1f6   :  { %v3851_v23 = vmul.f32 %v2269_v44, %v688_v11  ;;  %v2273_v17 = vsub.f32 1.0, %v2272_v6  ;;  %vm2278_vm9 = vmor %vm2276_vm8, %vm2277_vm7  ;;  %v2295_v48 = vand.u32 2147483647, %v3845_v43  ;;  %vm2291_vm12 = vweird.f32 %v3845_v43  ;;  %v4037_v44 = vld [vmem:[#allocation15_spill] sm:$0xff] }
 0x1f7   :  { %v1392_v49 = vpop.f32.mrf.mxu3  ;;  %v1649_v21 = vpop.f32.mrf.mxu0  ;;  %vm2382_vm8 = vcmask 259072  }
 0x1f8   :  { %v1393_v1 = vadd.f32 %v1392_v49, %v1320_v57  ;;  %v1650_v38 = vadd.f32 %v1649_v21, %v1486_v36  ;;  %v2274_v29 = vmul.f32 %v2506_v35, %v2273_v17  ;;  %v4038_v17 = vld [vmem:[#allocation16_spill] sm:$0xff]  ;;  %v2298_v49 = vor.u32 1.1754944e-38, %v2297_v30  ;;  %v4041_v30 = vld [vmem:[#allocation23_spill] sm:$0xff] }
 0x1f9   :  { %v696_v4 = vadd.f32 %v4038_v17, %v4037_v44  ;;  %vm2296_vm14 = vcmp.eq.f32.partialorder %v2295_v48, 8.507059e+37 }
 0x1fa   :  { %v2508_v59 = vpop.eup %2507  ;;  %v2452_v9 = vmul.f32 -1.442695, %v1393_v1  ;;  %v1768_v53 = vpop.f32.mrf.mxu2  ;;  %v2275_v34 = vadd.f32 %v2506_v35, %v2274_v29 }
 0x1fb   :  { %v1738_v8 = vpop.f32.mrf.mxu1  ;;  %v2510_v7 = vpop.eup %2509  ;;  %v3861_v46 = vadd.f32 1.0, %v2508_v59  ;;  %v1769_v50 = vadd.f32 %v1768_v53, %v1691_v39 }
 0x1fc   :  { %v3863_v31 = vadd.f32 %v1738_v8, %v1650_v38  ;;  %v2287_v55 = vmul.f32 %v2510_v7, %v3845_v43  ;;  %2511 = vpow2.f32 %v2452_v9  ;;  %v2279_v62 = vsel %vm2278_vm9, %v2506_v35, %v2275_v34 }
 0x1fd   :  { %2513 = vrcp.f32 %v3861_v46  ;;  %v2284_v16 = vsel %vm2281_vm10, %v2283_v5, %v2279_v62  ;;  %vm2292_vm11 = vweird.f32 %v2510_v7  ;;  %v2310_v60 = vand.u32 2147483647, %v3861_v46  ;;  %v4040_v62 = vld [vmem:[#allocation18_spill] sm:$0xff] }
 0x1fe   :  { %v3867_v25 = vmul.f32 %v2284_v16, %v692_v40  ;;  %v2288_v37 = vsub.f32 1.0, %v2287_v55  ;;  %vm2293_vm13 = vmor %vm2291_vm12, %vm2292_vm11  ;;  %v2312_v40 = vand.u32 2147483648, %v3861_v46  ;;  %vm2306_vm1 = vweird.f32 %v3861_v46  ;;  %v4039_v55 = vld [vmem:[#allocation17_spill] sm:$0xff] }
 0x1ff   :  { %v1855_v12 = vpop.f32.mrf.mxu3  ;;  %v1960_v11 = vpop.f32.mrf.mxu0  ;;  %v700_v16 = vadd.f32 %v4040_v62, %v4039_v55  ;;  %vm2311_vm3 = vcmp.eq.f32.partialorder %v2310_v60, 8.507059e+37 }
 0x200   :  { %v1856_v26 = vadd.f32 %v1855_v12, %v1769_v50  ;;  %v2289_v32 = vmul.f32 %v2510_v7, %v2288_v37  ;;  %v2313_v50 = vor.u32 1.1754944e-38, %v2312_v40 }
 0x202   :  { %v2512_v35 = vpop.eup %2511  ;;  %v1773_v57 = vpop.f32.mrf.mxu2  ;;  %v1961_v3 = vadd.f32 %v1960_v11, %v1856_v26  ;;  %v2290_v41 = vadd.f32 %v2510_v7, %v2289_v32 }
 0x203   :  { %v2033_v6 = vpop.f32.mrf.mxu1  ;;  %v2514_v36 = vpop.eup %2513  ;;  %v2135_v54 = vadd.f32 1.0, %v2512_v35  ;;  %v1774_v38 = vadd.f32 %v1773_v57, %v1695_v51 }
 0x204   :  { %v2302_v21 = vmul.f32 %v2514_v36, %v3861_v46  ;;  %v2034_v10 = vadd.f32 %v2033_v6, %v1961_v3  ;;  %v2294_v63 = vsel %vm2293_vm13, %v2510_v7, %v2290_v41  ;;  %vm2307_vm15 = vweird.f32 %v2514_v36 }
 0x205   :  { %2515 = vrcp.f32 %v2135_v54  ;;  %v2299_v1 = vsel %vm2296_vm14, %v2298_v49, %v2294_v63  ;;  %vm2308_vm2 = vmor %vm2306_vm1, %vm2307_vm15  ;;  %v2325_v3 = vand.u32 2147483647, %v2135_v54  ;;  %v2327_v6 = vand.u32 2147483648, %v2135_v54 }
 0x206   :  { %v2344_v29 = vadd.f32 %v3704_v24, %v2034_v10  ;;  %v3879_v43 = vmul.f32 %v2299_v1, %v696_v4  ;;  %v2303_v59 = vsub.f32 1.0, %v2302_v21  ;;  %vm2321_vm5 = vweird.f32 %v2135_v54  ;;  %v4042_v21 = vld [vmem:[#allocation19_spill] sm:$0xff]  ;;  %v4043_v10 = vld [vmem:[#allocation20_spill] sm:$0xff] }
 0x207   :  { %v1861_v45 = vpop.f32.mrf.mxu3  ;;  %v1964_v47 = vpop.f32.mrf.mxu0  ;;  %v2328_v49 = vor.u32 1.1754944e-38, %v2327_v6  ;;  %v704_v63 = vadd.f32 %v4043_v10, %v4042_v21  ;;  %vm2326_vm7 = vcmp.eq.f32.partialorder %v2325_v3, 8.507059e+37 }
 0x208   :  { %v2357_v9 = vmax.f32 %v2344_v29, 0.0  ;;  %v1862_v53 = vadd.f32 %v1861_v45, %v1774_v38  ;;  %v2304_v8 = vmul.f32 %v2514_v36, %v2303_v59 }
 0x20a   :  { %2370 = vst.msk [vmem:[%s3969_s3] sm:$0xff] %vm109_vm0, %v2357_v9  ;;  %v1778_v34 = vpop.f32.mrf.mxu2  ;;  %v1965_v24 = vadd.f32 %v1964_v47, %v1862_v53  ;;  %v2305_v39 = vadd.f32 %v2514_v36, %v2304_v8 }
 0x20b   :  { %v2037_v7 = vpop.f32.mrf.mxu1  ;;  %v2516_v5 = vpop.eup %2515  ;;  %v1779_v26 = vadd.f32 %v1778_v34, %v4041_v30 }
 0x20c   :  { %v2317_v37 = vmul.f32 %v2516_v5, %v2135_v54  ;;  %v2038_v61 = vadd.f32 %v2037_v7, %v1965_v24  ;;  %v2309_v12 = vsel %vm2308_vm2, %v2514_v36, %v2305_v39  ;;  %vm2322_vm4 = vweird.f32 %v2516_v5 }
 0x20d   :  { %v2314_v11 = vsel %vm2311_vm3, %v2313_v50, %v2309_v12  ;;  %vm2323_vm6 = vmor %vm2321_vm5, %vm2322_vm4 }
 0x20e   :  { %v2345_v32 = vadd.f32 %v3724_v2, %v2038_v61  ;;  %v3892_v48 = vmul.f32 %v2314_v11, %v700_v16  ;;  %v2318_v35 = vsub.f32 1.0, %v2317_v37 }
 0x20f   :  { %v1867_v57 = vpop.f32.mrf.mxu3  ;;  %v1968_v46 = vpop.f32.mrf.mxu0 }
 0x210   :  { %v2358_v41 = vmax.f32 %v2345_v32, 0.0  ;;  %v1868_v44 = vadd.f32 %v1867_v57, %v1779_v26  ;;  %v2319_v17 = vmul.f32 %v2516_v5, %v2318_v35 }
 0x212   :  { %2371 = vst.msk [vmem:[%s3969_s3 + $0x8] sm:$0xff] %vm109_vm0, %v2358_v41  ;;  %v1783_v36 = vpop.f32.mrf.mxu2  ;;  %v1969_v4 = vadd.f32 %v1968_v46, %v1868_v44  ;;  %v2320_v2 = vadd.f32 %v2516_v5, %v2319_v17 }
 0x213   :  { %v2041_v51 = vpop.f32.mrf.mxu1  ;;  %v1784_v59 = vadd.f32 %v1783_v36, %v3697_v22 }
 0x214   :  { %v2042_v1 = vadd.f32 %v2041_v51, %v1969_v4  ;;  %v2324_v38 = vsel %vm2323_vm6, %v2516_v5, %v2320_v2 }
 0x215   :  { %v2329_v29 = vsel %vm2326_vm7, %v2328_v49, %v2324_v38 }
 0x216   :  { %v2346_v45 = vadd.f32 %v3744_v19, %v2042_v1  ;;  %v3902_v47 = vmul.f32 %v2329_v29, %v704_v63 }
 0x217   :  { %v1873_v60 = vpop.f32.mrf.mxu3  ;;  %v1972_v40 = vpop.f32.mrf.mxu0 }
 0x218   :  { %v2359_v9 = vmax.f32 %v2346_v45, 0.0  ;;  %v1874_v53 = vadd.f32 %v1873_v60, %v1784_v59 }
 0x21a   :  { %2372 = vst.msk [vmem:[%s3969_s3 + $0x10] sm:$0xff] %vm109_vm0, %v2359_v9  ;;  %v1788_v54 = vpop.f32.mrf.mxu2  ;;  %v1973_v8 = vadd.f32 %v1972_v40, %v1874_v53 }
 0x21b   :  { %v2045_v34 = vpop.f32.mrf.mxu1  ;;  %v1789_v7 = vadd.f32 %v1788_v54, %v3717_v27 }
 0x21c   :  { %v2046_v24 = vadd.f32 %v2045_v34, %v1973_v8 }
 0x21e   :  { %v2347_v22 = vadd.f32 %v3764_v0, %v2046_v24 }
 0x21f   :  { %v1879_v19 = vpop.f32.mrf.mxu3  ;;  %v1976_v39 = vpop.f32.mrf.mxu0 }
 0x220   :  { %v2360_v5 = vmax.f32 %v2347_v22, 0.0  ;;  %v1880_v55 = vadd.f32 %v1879_v19, %v1789_v7 }
 0x222   :  { %2373 = vst.msk [vmem:[%s3969_s3 + $0x18] sm:$0xff] %vm109_vm0, %v2360_v5  ;;  %v1793_v62 = vpop.f32.mrf.mxu2  ;;  %v1977_v16 = vadd.f32 %v1976_v39, %v1880_v55 }
 0x223   :  { %v2049_v50 = vpop.f32.mrf.mxu1  ;;  %v1794_v61 = vadd.f32 %v1793_v62, %v3737_v14 }
 0x224   :  { %v2050_v37 = vadd.f32 %v2049_v50, %v1977_v16 }
 0x226   :  { %v2348_v12 = vadd.f32 %v3784_v58, %v2050_v37 }
 0x227   :  { %v1885_v27 = vpop.f32.mrf.mxu3  ;;  %v1980_v11 = vpop.f32.mrf.mxu0 }
 0x228   :  { %v2361_v0 = vmax.f32 %v2348_v12, 0.0  ;;  %v1886_v30 = vadd.f32 %v1885_v27, %v1794_v61 }
 0x22a   :  { %2374 = vst.msk [vmem:[%s3969_s3 + $0x20] sm:$0xff] %vm109_vm0, %v2361_v0  ;;  %v1798_v26 = vpop.f32.mrf.mxu2  ;;  %v1981_v32 = vadd.f32 %v1980_v11, %v1886_v30 }
 0x22b   :  { %v2053_v35 = vpop.f32.mrf.mxu1  ;;  %v1799_v46 = vadd.f32 %v1798_v26, %v3757_v28 }
 0x22c   :  { %v2054_v57 = vadd.f32 %v2053_v35, %v1981_v32 }
 0x22e   :  { %v2349_v3 = vadd.f32 %v3804_v15, %v2054_v57 }
 0x22f   :  { %v1891_v14 = vpop.f32.mrf.mxu3  ;;  %v1984_v6 = vpop.f32.mrf.mxu0 }
 0x230   :  { %v2362_v58 = vmax.f32 %v2349_v3, 0.0  ;;  %v1892_v41 = vadd.f32 %v1891_v14, %v1799_v46 }
 0x232   :  { %2375 = vst.msk [vmem:[%s3969_s3 + $0x28] sm:$0xff] %vm109_vm0, %v2362_v58  ;;  %v1803_v44 = vpop.f32.mrf.mxu2  ;;  %v1985_v17 = vadd.f32 %v1984_v6, %v1892_v41 }
 0x233   :  { %v2057_v36 = vpop.f32.mrf.mxu1  ;;  %v1804_v51 = vadd.f32 %v1803_v44, %v3777_v52 }
 0x234   :  { %v2058_v4 = vadd.f32 %v2057_v36, %v1985_v17 }
 0x236   :  { %v2350_v2 = vadd.f32 %v3821_v42, %v2058_v4 }
 0x237   :  { %v1897_v28 = vpop.f32.mrf.mxu3  ;;  %v1988_v49 = vpop.f32.mrf.mxu0 }
 0x238   :  { %v2363_v15 = vmax.f32 %v2350_v2, 0.0  ;;  %v1898_v21 = vadd.f32 %v1897_v28, %v1804_v51 }
 0x23a   :  { %2376 = vst.msk [vmem:[%s3969_s3 + $0x30] sm:$0xff] %vm109_vm0, %v2363_v15  ;;  %v1808_v10 = vpop.f32.mrf.mxu2  ;;  %v1989_v63 = vadd.f32 %v1988_v49, %v1898_v21 }
 0x23b   :  { %v2061_v1 = vpop.f32.mrf.mxu1  ;;  %v1809_v29 = vadd.f32 %v1808_v10, %v3797_v13 }
 0x23c   :  { %v2062_v38 = vadd.f32 %v2061_v1, %v1989_v63 }
 0x23e   :  { %v2351_v59 = vadd.f32 %v3836_v33, %v2062_v38 }
 0x23f   :  { %v1903_v52 = vpop.f32.mrf.mxu3  ;;  %v1992_v45 = vpop.f32.mrf.mxu0 }
 0x240   :  { %v2364_v42 = vmax.f32 %v2351_v59, 0.0  ;;  %v1904_v60 = vadd.f32 %v1903_v52, %v1809_v29 }
 0x242   :  { %2377 = vst.msk [vmem:[%s3969_s3 + $0x38] sm:$0xff] %vm109_vm0, %v2364_v42  ;;  %v1813_v40 = vpop.f32.mrf.mxu2  ;;  %v1993_v9 = vadd.f32 %v1992_v45, %v1904_v60 }
 0x243   :  { %v2065_v53 = vpop.f32.mrf.mxu1  ;;  %v1814_v8 = vadd.f32 %v1813_v40, %v3816_v20 }
 0x244   :  { %v2066_v54 = vadd.f32 %v2065_v53, %v1993_v9 }
 0x246   :  { %v2352_v34 = vadd.f32 %v3851_v23, %v2066_v54 }
 0x247   :  { %v1909_v13 = vpop.f32.mrf.mxu3  ;;  %v1996_v24 = vpop.f32.mrf.mxu0 }
 0x248   :  { %v2365_v33 = vmax.f32 %v2352_v34, 0.0  ;;  %v1910_v7 = vadd.f32 %v1909_v13, %v1814_v8 }
 0x24a   :  { %2378 = vst.msk [vmem:[%s3969_s3 + $0x40] sm:$0xff] %vm109_vm0, %v2365_v33  ;;  %v1818_v22 = vpop.f32.mrf.mxu2  ;;  %v1997_v19 = vadd.f32 %v1996_v24, %v1910_v7 }
 0x24b   :  { %v2069_v39 = vpop.f32.mrf.mxu1  ;;  %v1819_v55 = vadd.f32 %v1818_v22, %v3832_v18 }
 0x24c   :  { %v2070_v5 = vadd.f32 %v2069_v39, %v1997_v19 }
 0x24e   :  { %v2353_v62 = vadd.f32 %v3867_v25, %v2070_v5 }
 0x24f   :  { %v1915_v20 = vpop.f32.mrf.mxu3  ;;  %v2000_v16 = vpop.f32.mrf.mxu0 }
 0x250   :  { %v2366_v23 = vmax.f32 %v2353_v62, 0.0  ;;  %v1916_v50 = vadd.f32 %v1915_v20, %v1819_v55 }
 0x252   :  { %2379 = vst.msk [vmem:[%s3969_s3 + $0x48] sm:$0xff] %vm109_vm0, %v2366_v23  ;;  %v1823_v37 = vpop.f32.mrf.mxu2  ;;  %v2001_v61 = vadd.f32 %v2000_v16, %v1916_v50 }
 0x253   :  { %v2073_v12 = vpop.f32.mrf.mxu1  ;;  %v1824_v11 = vadd.f32 %v1823_v37, %v3847_v56 }
 0x254   :  { %v2074_v27 = vadd.f32 %v2073_v12, %v2001_v61 }
 0x256   :  { %v2354_v0 = vadd.f32 %v3879_v43, %v2074_v27 }
 0x257   :  { %v1921_v18 = vpop.f32.mrf.mxu3  ;;  %v2004_v30 = vpop.f32.mrf.mxu0 }
 0x258   :  { %v2367_v25 = vmax.f32 %v2354_v0, 0.0  ;;  %v1922_v26 = vadd.f32 %v1921_v18, %v1824_v11 }
 0x25a   :  { %2380 = vst.msk [vmem:[%s3969_s3 + $0x50] sm:$0xff] %vm109_vm0, %v2367_v25  ;;  %v2005_v32 = vadd.f32 %v2004_v30, %v1922_v26  ;;  %v1828_v57 = vpop.f32.mrf.mxu2 }
 0x25b   :  { %v2077_v35 = vpop.f32.mrf.mxu1  ;;  %v1829_v3 = vadd.f32 %v1828_v57, %v3863_v31 }
 0x25c   :  { %v2078_v46 = vadd.f32 %v2077_v35, %v2005_v32 }
 0x25e   :  { %v2355_v14 = vadd.f32 %v3892_v48, %v2078_v46 }
 0x25f   :  { %v1927_v56 = vpop.f32.mrf.mxu3  ;;  %v2008_v6 = vpop.f32.mrf.mxu0 }
 0x260   :  { %v2368_v43 = vmax.f32 %v2355_v14, 0.0  ;;  %v1928_v58 = vadd.f32 %v1927_v56, %v1829_v3 }
 0x262   :  { %2381 = vst.msk [vmem:[%s3969_s3 + $0x58] sm:$0xff] %vm109_vm0, %v2368_v43  ;;  %v2009_v41 = vadd.f32 %v2008_v6, %v1928_v58 }
 0x263   :  { %v2081_v44 = vpop.f32.mrf.mxu1 }
 0x264   :  { %v2082_v17 = vadd.f32 %v2081_v44, %v2009_v41 }
 0x266   :  { %v2356_v36 = vadd.f32 %v3902_v47, %v2082_v17 }
 0x268   :  { %v2369_v4 = vmax.f32 %v2356_v36, 0.0 }
 0x26a   :  { %2383 = vst.msk [vmem:[%s3969_s3 + $0x60] sm:$0x3f] %vm2382_vm8, %v2369_v4 }

</bundles_post_ra>
